<compile_context>
chip_gen: v7x
topology: tpu7x:2x2x1
jax: 0.10.0
libtpu: 0.0.40
codegen_flags: <defaults>
</compile_context>

<pallas_src>
import jax
import jax.numpy as jnp
from jax.experimental import pallas as pl
from jax.experimental.pallas import tpu as pltpu


def _conv1x1_kernel(w_ref, x_ref, o_ref):
    # w_ref: (C_out, C_in)    -- whole weight; same block index every step -> stays resident
    # x_ref: (C_in, TILE_HW)  -- one batch element, one pixel tile
    # o_ref: (C_out, TILE_HW) -- lane-dense output tile
    o_ref[...] = jnp.dot(
        w_ref[...], x_ref[...], preferred_element_type=jnp.float32
    ).astype(o_ref.dtype)
    # TODO(synk): if a BN scale/shift, bias or activation epilogue ever follows
    # this conv, pass them as extra VMEM/SMEM inputs and apply them to the f32
    # accumulator here before the astype/store (VPU work is free under the
    # MXU/DMA slack). The source module has no such epilogue, so nothing to fuse.


def _pick_pixel_tile(hw, max_tile=2048):
    """Pick the pixel-tile width.

    - hw <= max_tile: single full-extent block (grid step count 1 along pixels).
      A full-dim block is always layout-legal even if hw is not a 128-multiple.
    - hw >  max_tile: split into the fewest tiles with width <= max_tile, each a
      128-multiple (minimal ragged tail). This guarantees >= 2 pixel steps so a
      single-batch call still shards across both v7x TensorCores, and keeps the
      double-buffered in+out footprint (~2*(480+80)*t_hw*4 B) far below the
      v7x 32 MiB scoped-VMEM default.
    """
    if hw <= max_tile:
        return hw
    n_tiles = pl.cdiv(hw, max_tile)
    return 128 * pl.cdiv(hw, 128 * n_tiles)


def conv2d_1x1(x_nchw, weight_oihw, *, max_tile_hw=2048):
    """Equivalent of F.conv2d(x, weight, stride=1, bias=None) for 1x1 kernels.

    x_nchw:      (N, C_in, H, W)
    weight_oihw: (C_out, C_in, 1, 1)   -- PyTorch Conv2d weight layout
    returns:     (N, C_out, H, W)
    """
    n, c_in, h, w = x_nchw.shape
    c_out = weight_oihw.shape[0]
    hw = h * w
    out_dtype = x_nchw.dtype

    # Pure reshapes, no transposes: per batch element NCHW is already (C_in, H*W),
    # and the weight is already (C_out, C_in). Weight matches x's dtype (tiny cast,
    # 150 KB worst case); x is NOT cast -- that would add a full HBM round trip.
    x_flat = x_nchw.reshape(n, c_in, hw)
    w_mat = weight_oihw.reshape(c_out, c_in).astype(x_nchw.dtype)

    t_hw = _pick_pixel_tile(hw, max_tile_hw)
    grid = (n, pl.cdiv(hw, t_hw))

    itemsize = jnp.dtype(out_dtype).itemsize
    cost = pl.CostEstimate(
        flops=2 * n * hw * c_in * c_out,
        transcendentals=0,
        bytes_accessed=(
            x_flat.size * x_flat.dtype.itemsize
            + w_mat.size * w_mat.dtype.itemsize
            + n * c_out * hw * itemsize
        ),
    )

    out_flat = pl.pallas_call(
        _conv1x1_kernel,
        out_shape=jax.ShapeDtypeStruct((n, c_out, hw), out_dtype),
        grid_spec=pltpu.PrefetchScalarGridSpec(
            num_scalar_prefetch=0,
            grid=grid,
            in_specs=[
                # Weight: identical block index every step -> stays resident, no re-DMA.
                pl.BlockSpec((c_out, c_in), lambda b, s: (0, 0)),
                # Input: batch dim squeezed, one pixel tile per grid step.
                pl.BlockSpec((None, c_in, t_hw), lambda b, s: (b, 0, s)),
            ],
            out_specs=pl.BlockSpec((None, c_out, t_hw), lambda b, s: (b, 0, s)),
        ),
        compiler_params=pltpu.CompilerParams(
            dimension_semantics=("parallel", "parallel"),
        ),
        cost_estimate=cost,
    )(w_mat, x_flat)

    # (N, C_out, H*W) is already flattened NCHW -- just reshape.
    return out_flat.reshape(n, c_out, h, w)


if __name__ == "__main__":
    key = jax.random.PRNGKey(0)
    kx, kw = jax.random.split(key)

    # Shapes from the PyTorch module: x205 = randn([1, 480, 28, 28]),
    # Conv2d(480, 80, kernel_size=(1,1), bias=False) -> weight (80, 480, 1, 1).
    x = jax.random.normal(kx, (1, 480, 28, 28), dtype=jnp.float32)
    weight = jax.random.normal(kw, (80, 480, 1, 1), dtype=jnp.float32) * 0.02

    out = jax.block_until_ready(conv2d_1x1(x, weight))
    ref = jax.lax.conv_general_dilated(
        x, weight, window_strides=(1, 1), padding="VALID",
        dimension_numbers=("NCHW", "OIHW", "NCHW"),
    )
    assert out.shape == (1, 80, 28, 28), out.shape
    assert jnp.allclose(out, ref, atol=1e-3, rtol=1e-3)

    # Batched path (grid parallel over batch, still a single full pixel block).
    x2 = jax.random.normal(kx, (2, 480, 28, 28), dtype=jnp.float32)
    out2 = jax.block_until_ready(conv2d_1x1(x2, weight))
    ref2 = jax.lax.conv_general_dilated(
        x2, weight, window_strides=(1, 1), padding="VALID",
        dimension_numbers=("NCHW", "OIHW", "NCHW"),
    )
    assert out2.shape == (2, 80, 28, 28), out2.shape
    assert jnp.allclose(out2, ref2, atol=1e-3, rtol=1e-3)

    # Larger feature map exercises the tiled (>= 2 even 128-multiple tiles) path.
    x3 = jax.random.normal(kx, (1, 480, 56, 56), dtype=jnp.float32)
    out3 = jax.block_until_ready(conv2d_1x1(x3, weight))
    ref3 = jax.lax.conv_general_dilated(
        x3, weight, window_strides=(1, 1), padding="VALID",
        dimension_numbers=("NCHW", "OIHW", "NCHW"),
    )
    assert out3.shape == (1, 80, 56, 56), out3.shape
    assert jnp.allclose(out3, ref3, atol=1e-3, rtol=1e-3)

    print("KERNEL_OK")
</pallas_src>

<mosaic_0001>
module attributes {stable_mosaic.version = 11 : i64} {
  func.func @_conv1x1_kernel(%arg0: i32, %arg1: i32, %arg2: memref<80x480xf32, #tpu.memory_space<vmem>>, %arg3: memref<1x480x784xf32, #tpu.memory_space<vmem>>, %arg4: memref<1x80x784xf32, #tpu.memory_space<vmem>>) attributes {dimension_semantics = [#tpu.dimension_semantics<parallel>, #tpu.dimension_semantics<parallel>], iteration_bounds = array<i64: 1, 1>, scalar_prefetch = 0 : i64, scratch_operands = 0 : i64, tpu.core_type = #tpu.core_type<tc>, window_params = [{pipeline_mode = #tpu.pipeline_mode<synchronous>, transform_indices = @transform_0, window_bounds = array<i64: 80, 480>}, {transform_indices = @transform_1, window_bounds = array<i64: 1, 480, 784>}, {transform_indices = @transform_2, window_bounds = array<i64: 1, 80, 784>}]} {
    %c0 = arith.constant 0 : index
    %c0_0 = arith.constant 0 : index
    %0 = vector.load %arg2[%c0, %c0_0] : memref<80x480xf32, #tpu.memory_space<vmem>>, vector<80x480xf32>
    %c0_1 = arith.constant 0 : index
    %c0_2 = arith.constant 0 : index
    %c0_3 = arith.constant 0 : index
    %1 = vector.load %arg3[%c0_1, %c0_2, %c0_3] : memref<1x480x784xf32, #tpu.memory_space<vmem>>, vector<1x480x784xf32>
    %2 = vector.shape_cast %1 : vector<1x480x784xf32> to vector<480x784xf32>
    %cst = arith.constant dense<0.000000e+00> : vector<80x784xf32>
    %3 = tpu.matmul %0, %2, %cst {dimension_numbers = #tpu.dot_dimension_numbers<[1], [0], [0], [1], [0, 0, 1, 1], [], []>} : vector<80x480xf32>, vector<480x784xf32>, vector<80x784xf32> -> vector<80x784xf32>
    %c0_4 = arith.constant 0 : index
    %c0_5 = arith.constant 0 : index
    %c0_6 = arith.constant 0 : index
    %4 = vector.load %arg4[%c0_4, %c0_5, %c0_6] : memref<1x80x784xf32, #tpu.memory_space<vmem>>, vector<1x80x784xf32>
    %5 = vector.shape_cast %4 : vector<1x80x784xf32> to vector<80x784xf32>
    %6 = vector.shape_cast %3 : vector<80x784xf32> to vector<1x80x784xf32>
    tpu.vector_store %arg4[%c0_4, %c0_5, %c0_6], %6 {strides = array<i32>} : memref<1x80x784xf32, #tpu.memory_space<vmem>>, vector<1x80x784xf32>,
    return
  }
  func.func @transform_0(%arg0: i32, %arg1: i32) -> (i32, i32) {
    %c0_i32 = arith.constant 0 : i32
    %c0_i32_0 = arith.constant 0 : i32
    %c0_i32_1 = arith.constant 0 : i32
    return %c0_i32, %c0_i32_0 : i32, i32
  }
  func.func @transform_1(%arg0: i32, %arg1: i32) -> (i32, i32, i32) {
    %c0_i32 = arith.constant 0 : i32
    %c0_i32_0 = arith.constant 0 : i32
    return %arg0, %c0_i32, %arg1 : i32, i32, i32
  }
  func.func @transform_2(%arg0: i32, %arg1: i32) -> (i32, i32, i32) {
    %c0_i32 = arith.constant 0 : i32
    %c0_i32_0 = arith.constant 0 : i32
    return %arg0, %c0_i32, %arg1 : i32, i32, i32
  }
}

</mosaic_0001>

<bundles_post_ra>
// kernel: tpu_custom_call.1
= control target key start
LH: loop header
LB: loop body
LE: loop exit
PB: predicated region body
PF: predicated region fallthrough
CT: control target
= control target key end

     0   :  { %vm472_vm0 = vcmask 785408   ;;  %s3967_s0 = inlined_call_operand.vmem [shape: f32[80,480], index: 0, kind: input, shape index: {}]   ;;  %s3968_s1 = inlined_call_operand.vmem [shape: f32[1,480,784], index: 1, kind: input, shape index: {}]   ;;  %s3969_s2 = inlined_call_operand.hbm [shape: f32[1,80,784], index: 2, kind: output, shape index: {}]  }
   0x1   :  { %v53_v0 = vld [vmem:[%s3968_s1 + $0x8] sm:$0xff]  ;;  %v60_v1 = vld [vmem:[%s3968_s1 + $0x40] sm:$0xff]  ;;  %v55_v2 = vld [vmem:[%s3968_s1 + $0x18] sm:$0xff] }
   0x2   :  { %v1672_v3 = vpack.c.bf16 %v60_v1, %v53_v0  ;;  %v62_v4 = vld [vmem:[%s3968_s1 + $0x50] sm:$0xff]  ;;  %v52_v5 = vld [vmem:[%s3968_s1] sm:$0xff]  ;;  %v59_v6 = vld [vmem:[%s3968_s1 + $0x38] sm:$0xff] }
   0x3   :  { %v1792_v7 = vpack.c.bf16 %v62_v4, %v55_v2  ;;  %v1674_v8 = vpack.c.bf16 %v59_v6, %v52_v5  ;;  %v54_v9 = vld [vmem:[%s3968_s1 + $0x10] sm:$0xff]  ;;  %v61_v10 = vld [vmem:[%s3968_s1 + $0x48] sm:$0xff]  ;;  %v67_v11 = vld [vmem:[%s3968_s1 + $0x78] sm:$0xff] }
   0x4   :  { %1673 = vmatprep.subr.bf16.mxu0 %v1672_v3  ;;  %v1794_v12 = vpack.c.bf16 %v61_v10, %v54_v9  ;;  %v74_v13 = vld [vmem:[%s3968_s1 + $0xb0] sm:$0xff]  ;;  %v69_v14 = vld [vmem:[%s3968_s1 + $0x88] sm:$0xff]  ;;  %v76_v15 = vld [vmem:[%s3968_s1 + $0xc0] sm:$0xff] }
   0x5   :  { %1793 = vmatprep.subr.bf16.mxu1 %v1792_v7  ;;  %1675 = vmatpush1.bf16.msra.mxu0 %v1674_v8  ;;  %v1676_v16 = vpack.c.bf16 %v74_v13, %v67_v11  ;;  %v1796_v17 = vpack.c.bf16 %v76_v15, %v69_v14  ;;  %v66_v18 = vld [vmem:[%s3968_s1 + $0x70] sm:$0xff]  ;;  %v73_v19 = vld [vmem:[%s3968_s1 + $0xa8] sm:$0xff]  ;;  %v68_v20 = vld [vmem:[%s3968_s1 + $0x80] sm:$0xff] }
   0x6   :  { %1795 = vmatpush1.bf16.msra.mxu1 %v1794_v12  ;;  %v1678_v21 = vpack.c.bf16 %v73_v19, %v66_v18  ;;  %v75_v22 = vld [vmem:[%s3968_s1 + $0xb8] sm:$0xff]  ;;  %v81_v23 = vld [vmem:[%s3968_s1 + $0xe8] sm:$0xff]  ;;  %v88_v24 = vld [vmem:[%s3968_s1 + $0x120] sm:$0xff] }
   0x7   :  { %1677 = vmatprep.subr.bf16.mxu0 %v1676_v16  ;;  %1797 = vmatprep.subr.bf16.mxu1 %v1796_v17  ;;  %v1798_v25 = vpack.c.bf16 %v75_v22, %v68_v20  ;;  %v1680_v26 = vpack.c.bf16 %v88_v24, %v81_v23  ;;  %v83_v27 = vld [vmem:[%s3968_s1 + $0xf8] sm:$0xff]  ;;  %v90_v28 = vld [vmem:[%s3968_s1 + $0x130] sm:$0xff]  ;;  %v80_v29 = vld [vmem:[%s3968_s1 + $0xe0] sm:$0xff] }
   0x8   :  { %v1800_v30 = vpack.c.bf16 %v90_v28, %v83_v27  ;;  %v87_v31 = vld [vmem:[%s3968_s1 + $0x118] sm:$0xff]  ;;  %v82_v32 = vld [vmem:[%s3968_s1 + $0xf0] sm:$0xff]  ;;  %v89_v33 = vld [vmem:[%s3968_s1 + $0x128] sm:$0xff] }
   0x9   :  { %1679 = vmatpush1.bf16.msra.mxu0 %v1678_v21  ;;  %v1682_v34 = vpack.c.bf16 %v87_v31, %v80_v29  ;;  %v95_v35 = vld [vmem:[%s3968_s1 + $0x158] sm:$0xff]  ;;  %v102_v36 = vld [vmem:[%s3968_s1 + $0x190] sm:$0xff]  ;;  %v97_v37 = vld [vmem:[%s3968_s1 + $0x168] sm:$0xff]  ;;  %v1802_v38 = vpack.c.bf16 %v89_v33, %v82_v32 }
   0xa   :  { %1799 = vmatpush1.bf16.msra.mxu1 %v1798_v25  ;;  %1681 = vmatprep.subr.bf16.mxu0 %v1680_v26  ;;  %v1684_v39 = vpack.c.bf16 %v102_v36, %v95_v35  ;;  %v104_v40 = vld [vmem:[%s3968_s1 + $0x1a0] sm:$0xff]  ;;  %v94_v41 = vld [vmem:[%s3968_s1 + $0x150] sm:$0xff]  ;;  %v101_v42 = vld [vmem:[%s3968_s1 + $0x188] sm:$0xff] }
   0xb   :  { %1801 = vmatprep.subr.bf16.mxu1 %v1800_v30  ;;  %v1804_v43 = vpack.c.bf16 %v104_v40, %v97_v37  ;;  %v96_v44 = vld [vmem:[%s3968_s1 + $0x160] sm:$0xff]  ;;  %v103_v45 = vld [vmem:[%s3968_s1 + $0x198] sm:$0xff]  ;;  %v109_v46 = vld [vmem:[%s3968_s1 + $0x1c8] sm:$0xff]  ;;  %v1686_v50 = vpack.c.bf16 %v101_v42, %v94_v41 }
   0xc   :  { %v116_v47 = vld [vmem:[%s3968_s1 + $0x200] sm:$0xff]  ;;  %v111_v48 = vld [vmem:[%s3968_s1 + $0x1d8] sm:$0xff]  ;;  %v118_v49 = vld [vmem:[%s3968_s1 + $0x210] sm:$0xff]  ;;  %v1806_v51 = vpack.c.bf16 %v103_v45, %v96_v44 }
   0xd   :  { %1683 = vmatpush1.bf16.msra.mxu0 %v1682_v34  ;;  %v1688_v52 = vpack.c.bf16 %v116_v47, %v109_v46  ;;  %v108_v53 = vld [vmem:[%s3968_s1 + $0x1c0] sm:$0xff]  ;;  %v115_v54 = vld [vmem:[%s3968_s1 + $0x1f8] sm:$0xff]  ;;  %v110_v55 = vld [vmem:[%s3968_s1 + $0x1d0] sm:$0xff]  ;;  %v1808_v56 = vpack.c.bf16 %v118_v49, %v111_v48 }
   0xe   :  { %1803 = vmatpush1.bf16.msra.mxu1 %v1802_v38  ;;  %1685 = vmatprep.subr.bf16.mxu0 %v1684_v39  ;;  %v117_v57 = vld [vmem:[%s3968_s1 + $0x208] sm:$0xff]  ;;  %v123_v58 = vld [vmem:[%s3968_s1 + $0x238] sm:$0xff]  ;;  %v130_v59 = vld [vmem:[%s3968_s1 + $0x270] sm:$0xff]  ;;  %v1690_v62 = vpack.c.bf16 %v115_v54, %v108_v53 }
   0xf   :  { %1805 = vmatprep.subr.bf16.mxu1 %v1804_v43  ;;  %v125_v60 = vld [vmem:[%s3968_s1 + $0x248] sm:$0xff]  ;;  %v132_v61 = vld [vmem:[%s3968_s1 + $0x280] sm:$0xff]  ;;  %v1810_v63 = vpack.c.bf16 %v117_v57, %v110_v55  ;;  %v1692_v0 = vpack.c.bf16 %v130_v59, %v123_v58  ;;  %v122_v1 = vld [vmem:[%s3968_s1 + $0x230] sm:$0xff] }
  0x10   :  { %v129_v2 = vld [vmem:[%s3968_s1 + $0x268] sm:$0xff]  ;;  %v124_v3 = vld [vmem:[%s3968_s1 + $0x240] sm:$0xff]  ;;  %v1812_v4 = vpack.c.bf16 %v132_v61, %v125_v60  ;;  %v131_v5 = vld [vmem:[%s3968_s1 + $0x278] sm:$0xff] }
  0x11   :  { %1687 = vmatpush1.bf16.msra.mxu0 %v1686_v50  ;;  %v137_v6 = vld [vmem:[%s3968_s1 + $0x2a8] sm:$0xff]  ;;  %v144_v7 = vld [vmem:[%s3968_s1 + $0x2e0] sm:$0xff]  ;;  %v139_v8 = vld [vmem:[%s3968_s1 + $0x2b8] sm:$0xff]  ;;  %v1694_v10 = vpack.c.bf16 %v129_v2, %v122_v1  ;;  %v1814_v11 = vpack.c.bf16 %v131_v5, %v124_v3 }
  0x12   :  { %1807 = vmatpush1.bf16.msra.mxu1 %v1806_v51  ;;  %1689 = vmatprep.subr.bf16.mxu0 %v1688_v52  ;;  %v146_v9 = vld [vmem:[%s3968_s1 + $0x2f0] sm:$0xff]  ;;  %v1696_v12 = vpack.c.bf16 %v144_v7, %v137_v6  ;;  %v136_v13 = vld [vmem:[%s3968_s1 + $0x2a0] sm:$0xff]  ;;  %v143_v14 = vld [vmem:[%s3968_s1 + $0x2d8] sm:$0xff] }
  0x13   :  { %1809 = vmatprep.subr.bf16.mxu1 %v1808_v56  ;;  %v138_v15 = vld [vmem:[%s3968_s1 + $0x2b0] sm:$0xff]  ;;  %v1816_v16 = vpack.c.bf16 %v146_v9, %v139_v8  ;;  %v145_v17 = vld [vmem:[%s3968_s1 + $0x2e8] sm:$0xff]  ;;  %v151_v18 = vld [vmem:[%s3968_s1 + $0x318] sm:$0xff]  ;;  %v1698_v22 = vpack.c.bf16 %v143_v14, %v136_v13 }
  0x14   :  { %v158_v19 = vld [vmem:[%s3968_s1 + $0x350] sm:$0xff]  ;;  %v153_v20 = vld [vmem:[%s3968_s1 + $0x328] sm:$0xff]  ;;  %v160_v21 = vld [vmem:[%s3968_s1 + $0x360] sm:$0xff]  ;;  %v1818_v23 = vpack.c.bf16 %v145_v17, %v138_v15 }
  0x15   :  { %1691 = vmatpush1.bf16.msra.mxu0 %v1690_v62  ;;  %v1700_v24 = vpack.c.bf16 %v158_v19, %v151_v18  ;;  %v150_v25 = vld [vmem:[%s3968_s1 + $0x310] sm:$0xff]  ;;  %v157_v26 = vld [vmem:[%s3968_s1 + $0x348] sm:$0xff]  ;;  %v152_v27 = vld [vmem:[%s3968_s1 + $0x320] sm:$0xff]  ;;  %v1820_v28 = vpack.c.bf16 %v160_v21, %v153_v20 }
  0x16   :  { %1811 = vmatpush1.bf16.msra.mxu1 %v1810_v63  ;;  %1693 = vmatprep.subr.bf16.mxu0 %v1692_v0  ;;  %v159_v29 = vld [vmem:[%s3968_s1 + $0x358] sm:$0xff]  ;;  %v165_v30 = vld [vmem:[%s3968_s1 + $0x388] sm:$0xff]  ;;  %v172_v31 = vld [vmem:[%s3968_s1 + $0x3c0] sm:$0xff]  ;;  %v1702_v34 = vpack.c.bf16 %v157_v26, %v150_v25 }
  0x17   :  { %1813 = vmatprep.subr.bf16.mxu1 %v1812_v4  ;;  %v167_v32 = vld [vmem:[%s3968_s1 + $0x398] sm:$0xff]  ;;  %v174_v33 = vld [vmem:[%s3968_s1 + $0x3d0] sm:$0xff]  ;;  %v1822_v35 = vpack.c.bf16 %v159_v29, %v152_v27  ;;  %v1704_v36 = vpack.c.bf16 %v172_v31, %v165_v30  ;;  %v164_v37 = vld [vmem:[%s3968_s1 + $0x380] sm:$0xff] }
  0x18   :  { %v171_v38 = vld [vmem:[%s3968_s1 + $0x3b8] sm:$0xff]  ;;  %v166_v39 = vld [vmem:[%s3968_s1 + $0x390] sm:$0xff]  ;;  %v1824_v40 = vpack.c.bf16 %v174_v33, %v167_v32  ;;  %v173_v41 = vld [vmem:[%s3968_s1 + $0x3c8] sm:$0xff] }
  0x19   :  { %1695 = vmatpush1.bf16.msra.mxu0 %v1694_v10  ;;  %v179_v42 = vld [vmem:[%s3968_s1 + $0x3f8] sm:$0xff]  ;;  %v186_v43 = vld [vmem:[%s3968_s1 + $0x430] sm:$0xff]  ;;  %v181_v44 = vld [vmem:[%s3968_s1 + $0x408] sm:$0xff]  ;;  %v1706_v46 = vpack.c.bf16 %v171_v38, %v164_v37  ;;  %v1826_v47 = vpack.c.bf16 %v173_v41, %v166_v39 }
  0x1a   :  { %1815 = vmatpush1.bf16.msra.mxu1 %v1814_v11  ;;  %1697 = vmatprep.subr.bf16.mxu0 %v1696_v12  ;;  %v188_v45 = vld [vmem:[%s3968_s1 + $0x440] sm:$0xff]  ;;  %v1708_v48 = vpack.c.bf16 %v186_v43, %v179_v42  ;;  %v178_v49 = vld [vmem:[%s3968_s1 + $0x3f0] sm:$0xff]  ;;  %v185_v50 = vld [vmem:[%s3968_s1 + $0x428] sm:$0xff] }
  0x1b   :  { %1817 = vmatprep.subr.bf16.mxu1 %v1816_v16  ;;  %v180_v51 = vld [vmem:[%s3968_s1 + $0x400] sm:$0xff]  ;;  %v1828_v52 = vpack.c.bf16 %v188_v45, %v181_v44  ;;  %v187_v53 = vld [vmem:[%s3968_s1 + $0x438] sm:$0xff]  ;;  %v193_v54 = vld [vmem:[%s3968_s1 + $0x468] sm:$0xff]  ;;  %v1710_v58 = vpack.c.bf16 %v185_v50, %v178_v49 }
  0x1c   :  { %v200_v55 = vld [vmem:[%s3968_s1 + $0x4a0] sm:$0xff]  ;;  %v195_v56 = vld [vmem:[%s3968_s1 + $0x478] sm:$0xff]  ;;  %v202_v57 = vld [vmem:[%s3968_s1 + $0x4b0] sm:$0xff]  ;;  %v1830_v59 = vpack.c.bf16 %v187_v53, %v180_v51 }
  0x1d   :  { %1699 = vmatpush1.bf16.msra.mxu0 %v1698_v22  ;;  %v1712_v60 = vpack.c.bf16 %v200_v55, %v193_v54  ;;  %v192_v61 = vld [vmem:[%s3968_s1 + $0x460] sm:$0xff]  ;;  %v199_v62 = vld [vmem:[%s3968_s1 + $0x498] sm:$0xff]  ;;  %v194_v63 = vld [vmem:[%s3968_s1 + $0x470] sm:$0xff]  ;;  %v1832_v0 = vpack.c.bf16 %v202_v57, %v195_v56 }
  0x1e   :  { %1819 = vmatpush1.bf16.msra.mxu1 %v1818_v23  ;;  %1701 = vmatprep.subr.bf16.mxu0 %v1700_v24  ;;  %v201_v1 = vld [vmem:[%s3968_s1 + $0x4a8] sm:$0xff]  ;;  %v207_v2 = vld [vmem:[%s3968_s1 + $0x4d8] sm:$0xff]  ;;  %v214_v3 = vld [vmem:[%s3968_s1 + $0x510] sm:$0xff]  ;;  %v1714_v6 = vpack.c.bf16 %v199_v62, %v192_v61 }
  0x1f   :  { %1821 = vmatprep.subr.bf16.mxu1 %v1820_v28  ;;  %v209_v4 = vld [vmem:[%s3968_s1 + $0x4e8] sm:$0xff]  ;;  %v216_v5 = vld [vmem:[%s3968_s1 + $0x520] sm:$0xff]  ;;  %v206_v7 = vld [vmem:[%s3968_s1 + $0x4d0] sm:$0xff]  ;;  %v1834_v8 = vpack.c.bf16 %v201_v1, %v194_v63  ;;  %v1716_v9 = vpack.c.bf16 %v214_v3, %v207_v2 }
  0x20   :  { %v213_v10 = vld [vmem:[%s3968_s1 + $0x508] sm:$0xff]  ;;  %v208_v11 = vld [vmem:[%s3968_s1 + $0x4e0] sm:$0xff]  ;;  %v215_v12 = vld [vmem:[%s3968_s1 + $0x518] sm:$0xff]  ;;  %v1836_v13 = vpack.c.bf16 %v216_v5, %v209_v4 }
  0x21   :  { %1703 = vmatpush1.bf16.msra.mxu0 %v1702_v34  ;;  %v221_v14 = vld [vmem:[%s3968_s1 + $0x548] sm:$0xff]  ;;  %v228_v15 = vld [vmem:[%s3968_s1 + $0x580] sm:$0xff]  ;;  %v223_v17 = vld [vmem:[%s3968_s1 + $0x558] sm:$0xff]  ;;  %v1718_v19 = vpack.c.bf16 %v213_v10, %v206_v7  ;;  %v1838_v20 = vpack.c.bf16 %v215_v12, %v208_v11 }
  0x22   :  { %1823 = vmatpush1.bf16.msra.mxu1 %v1822_v35  ;;  %1705 = vmatprep.subr.bf16.mxu0 %v1704_v36  ;;  %v13_v16 = vld [vmem:[%s3967_s0 + $0x8] sm:$0xff]  ;;  %v230_v18 = vld [vmem:[%s3968_s1 + $0x590] sm:$0xff]  ;;  %v1720_v21 = vpack.c.bf16 %v228_v15, %v221_v14  ;;  %v220_v22 = vld [vmem:[%s3968_s1 + $0x540] sm:$0xff] }
  0x23   :  { %1825 = vmatprep.subr.bf16.mxu1 %v1824_v40  ;;  %567 = vmatprep.mubr.f32.mxu0 %v13_v16  ;;  %v227_v23 = vld [vmem:[%s3968_s1 + $0x578] sm:$0xff]  ;;  %v222_v24 = vld [vmem:[%s3968_s1 + $0x550] sm:$0xff]  ;;  %v1840_v25 = vpack.c.bf16 %v230_v18, %v223_v17  ;;  %v229_v26 = vld [vmem:[%s3968_s1 + $0x588] sm:$0xff] }
  0x24   :  { %817 = vmatprep.mubr.f32.mxu1 %v13_v16  ;;  %v235_v27 = vld [vmem:[%s3968_s1 + $0x5b8] sm:$0xff]  ;;  %v242_v28 = vld [vmem:[%s3968_s1 + $0x5f0] sm:$0xff]  ;;  %v237_v29 = vld [vmem:[%s3968_s1 + $0x5c8] sm:$0xff]  ;;  %v1722_v31 = vpack.c.bf16 %v227_v23, %v220_v22  ;;  %v1842_v32 = vpack.c.bf16 %v229_v26, %v222_v24 }
  0x25   :  { %1707 = vmatpush1.bf16.msra.mxu0 %v1706_v46  ;;  %v244_v30 = vld [vmem:[%s3968_s1 + $0x600] sm:$0xff]  ;;  %v1724_v33 = vpack.c.bf16 %v242_v28, %v235_v27  ;;  %v234_v34 = vld [vmem:[%s3968_s1 + $0x5b0] sm:$0xff]  ;;  %v241_v35 = vld [vmem:[%s3968_s1 + $0x5e8] sm:$0xff] }
  0x26   :  { %1827 = vmatpush1.bf16.msra.mxu1 %v1826_v47  ;;  %1709 = vmatprep.subr.bf16.mxu0 %v1708_v48  ;;  %v236_v36 = vld [vmem:[%s3968_s1 + $0x5c0] sm:$0xff]  ;;  %v1844_v37 = vpack.c.bf16 %v244_v30, %v237_v29  ;;  %v243_v38 = vld [vmem:[%s3968_s1 + $0x5f8] sm:$0xff]  ;;  %v249_v39 = vld [vmem:[%s3968_s1 + $0x628] sm:$0xff]  ;;  %v1726_v43 = vpack.c.bf16 %v241_v35, %v234_v34 }
  0x27   :  { %1829 = vmatprep.subr.bf16.mxu1 %v1828_v52  ;;  %v256_v40 = vld [vmem:[%s3968_s1 + $0x660] sm:$0xff]  ;;  %v251_v41 = vld [vmem:[%s3968_s1 + $0x638] sm:$0xff]  ;;  %v258_v42 = vld [vmem:[%s3968_s1 + $0x670] sm:$0xff]  ;;  %v1846_v44 = vpack.c.bf16 %v243_v38, %v236_v36 }
  0x28   :  { %v1728_v45 = vpack.c.bf16 %v256_v40, %v249_v39  ;;  %v248_v46 = vld [vmem:[%s3968_s1 + $0x620] sm:$0xff]  ;;  %v255_v47 = vld [vmem:[%s3968_s1 + $0x658] sm:$0xff]  ;;  %v250_v48 = vld [vmem:[%s3968_s1 + $0x630] sm:$0xff]  ;;  %v1848_v49 = vpack.c.bf16 %v258_v42, %v251_v41 }
  0x29   :  { %1711 = vmatpush1.bf16.msra.mxu0 %v1710_v58  ;;  %v257_v50 = vld [vmem:[%s3968_s1 + $0x668] sm:$0xff]  ;;  %v263_v51 = vld [vmem:[%s3968_s1 + $0x698] sm:$0xff]  ;;  %v270_v52 = vld [vmem:[%s3968_s1 + $0x6d0] sm:$0xff]  ;;  %v1730_v55 = vpack.c.bf16 %v255_v47, %v248_v46 }
  0x2a   :  { %1831 = vmatpush1.bf16.msra.mxu1 %v1830_v59  ;;  %1713 = vmatprep.subr.bf16.mxu0 %v1712_v60  ;;  %v265_v53 = vld [vmem:[%s3968_s1 + $0x6a8] sm:$0xff]  ;;  %v272_v54 = vld [vmem:[%s3968_s1 + $0x6e0] sm:$0xff]  ;;  %v1850_v56 = vpack.c.bf16 %v257_v50, %v250_v48  ;;  %v1732_v57 = vpack.c.bf16 %v270_v52, %v263_v51  ;;  %v262_v58 = vld [vmem:[%s3968_s1 + $0x690] sm:$0xff] }
  0x2b   :  { %1833 = vmatprep.subr.bf16.mxu1 %v1832_v0  ;;  %v269_v59 = vld [vmem:[%s3968_s1 + $0x6c8] sm:$0xff]  ;;  %v264_v60 = vld [vmem:[%s3968_s1 + $0x6a0] sm:$0xff]  ;;  %v1852_v61 = vpack.c.bf16 %v272_v54, %v265_v53  ;;  %v271_v62 = vld [vmem:[%s3968_s1 + $0x6d8] sm:$0xff] }
  0x2c   :  { %v277_v63 = vld [vmem:[%s3968_s1 + $0x708] sm:$0xff]  ;;  %v284_v0 = vld [vmem:[%s3968_s1 + $0x740] sm:$0xff]  ;;  %v279_v1 = vld [vmem:[%s3968_s1 + $0x718] sm:$0xff]  ;;  %v1734_v3 = vpack.c.bf16 %v269_v59, %v262_v58  ;;  %v1854_v4 = vpack.c.bf16 %v271_v62, %v264_v60 }
  0x2d   :  { %1715 = vmatpush1.bf16.msra.mxu0 %v1714_v6  ;;  %v286_v2 = vld [vmem:[%s3968_s1 + $0x750] sm:$0xff]  ;;  %v1736_v5 = vpack.c.bf16 %v284_v0, %v277_v63  ;;  %v276_v6 = vld [vmem:[%s3968_s1 + $0x700] sm:$0xff]  ;;  %v283_v7 = vld [vmem:[%s3968_s1 + $0x738] sm:$0xff] }
  0x2e   :  { %1835 = vmatpush1.bf16.msra.mxu1 %v1834_v8  ;;  %1717 = vmatprep.subr.bf16.mxu0 %v1716_v9  ;;  %v278_v8 = vld [vmem:[%s3968_s1 + $0x710] sm:$0xff]  ;;  %v1856_v9 = vpack.c.bf16 %v286_v2, %v279_v1  ;;  %v285_v10 = vld [vmem:[%s3968_s1 + $0x748] sm:$0xff]  ;;  %v291_v11 = vld [vmem:[%s3968_s1 + $0x778] sm:$0xff]  ;;  %v1738_v16 = vpack.c.bf16 %v283_v7, %v276_v6 }
  0x2f   :  { %1837 = vmatprep.subr.bf16.mxu1 %v1836_v13  ;;  %v298_v12 = vld [vmem:[%s3968_s1 + $0x7b0] sm:$0xff]  ;;  %v293_v13 = vld [vmem:[%s3968_s1 + $0x788] sm:$0xff]  ;;  %v300_v14 = vld [vmem:[%s3968_s1 + $0x7c0] sm:$0xff]  ;;  %v1858_v17 = vpack.c.bf16 %v285_v10, %v278_v8 }
  0x30   :  { %v2660_v15 = vld [vmem:[%s3967_s0] sm:$0xff]  ;;  %v1740_v18 = vpack.c.bf16 %v298_v12, %v291_v11  ;;  %v1860_v22 = vpack.c.bf16 %v300_v14, %v293_v13  ;;  %v299_v23 = vld [vmem:[%s3968_s1 + $0x7b8] sm:$0xff]  ;;  %v305_v24 = vld [vmem:[%s3968_s1 + $0x7e8] sm:$0xff] }
  0x31   :  { %1719 = vmatpush1.bf16.msra.mxu0 %v1718_v19  ;;  %v290_v19 = vld [vmem:[%s3968_s1 + $0x770] sm:$0xff]  ;;  %v307_v26 = vld [vmem:[%s3968_s1 + $0x7f8] sm:$0xff]  ;;  %v2690_v28 = vld [vmem:[%s3967_s0 + $0x28] sm:$0xff] }
  0x32   :  { %1839 = vmatpush1.bf16.msra.mxu1 %v1838_v20  ;;  %1721 = vmatprep.subr.bf16.mxu0 %v1720_v21  ;;  %v297_v20 = vld [vmem:[%s3968_s1 + $0x7a8] sm:$0xff]  ;;  %v292_v21 = vld [vmem:[%s3968_s1 + $0x780] sm:$0xff]  ;;  %v314_v27 = vld [vmem:[%s3968_s1 + $0x830] sm:$0xff] }
  0x33   :  { %1841 = vmatprep.subr.bf16.mxu1 %v1840_v25  ;;  %v312_v25 = vld [vmem:[%s3968_s1 + $0x820] sm:$0xff]  ;;  %v1742_v29 = vpack.c.bf16 %v297_v20, %v290_v19  ;;  %v311_v34 = vld [vmem:[%s3968_s1 + $0x818] sm:$0xff]  ;;  %v306_v35 = vld [vmem:[%s3968_s1 + $0x7f0] sm:$0xff]  ;;  %v1864_v36 = vpack.c.bf16 %v314_v27, %v307_v26 }
  0x34   :  { %v2696_v30 = vld [vmem:[%s3967_s0 + $0x20] sm:$0xff]  ;;  %v319_v38 = vld [vmem:[%s3968_s1 + $0x858] sm:$0xff]  ;;  %v326_v39 = vld [vmem:[%s3968_s1 + $0x890] sm:$0xff] }
  0x35   :  { %1723 = vmatpush1.bf16.msra.mxu0 %v1722_v31  ;;  %v1862_v31 = vpack.c.bf16 %v299_v23, %v292_v21  ;;  %v321_v40 = vld [vmem:[%s3968_s1 + $0x868] sm:$0xff]  ;;  %v328_v41 = vld [vmem:[%s3968_s1 + $0x8a0] sm:$0xff]  ;;  %v1748_v46 = vpack.c.bf16 %v326_v39, %v319_v38  ;;  %v318_v47 = vld [vmem:[%s3968_s1 + $0x850] sm:$0xff] }
  0x36   :  { %1843 = vmatpush1.bf16.msra.mxu1 %v1842_v32  ;;  %1725 = vmatprep.subr.bf16.mxu0 %v1724_v33  ;;  %v1744_v32 = vpack.c.bf16 %v312_v25, %v305_v24  ;;  %v304_v33 = vld [vmem:[%s3968_s1 + $0x7e0] sm:$0xff]  ;;  %v2728_v42 = vld [vmem:[%s3967_s0 + $0x48] sm:$0xff]  ;;  %v1868_v50 = vpack.c.bf16 %v328_v41, %v321_v40  ;;  %v327_v51 = vld [vmem:[%s3968_s1 + $0x898] sm:$0xff] }
  0x37   :  { %1845 = vmatprep.subr.bf16.mxu1 %v1844_v37  ;;  %v313_v37 = vld [vmem:[%s3968_s1 + $0x828] sm:$0xff]  ;;  %v340_v53 = vld [vmem:[%s3968_s1 + $0x900] sm:$0xff]  ;;  %v335_v54 = vld [vmem:[%s3968_s1 + $0x8d8] sm:$0xff] }
  0x38   :  { %v325_v48 = vld [vmem:[%s3968_s1 + $0x888] sm:$0xff]  ;;  %v2772_v58 = vld [vmem:[%s3967_s0 + $0x60] sm:$0xff]  ;;  %v339_v62 = vld [vmem:[%s3968_s1 + $0x8f8] sm:$0xff] }
  0x39   :  { %1727 = vmatpush1.bf16.msra.mxu0 %v1726_v43  ;;  %v1746_v43 = vpack.c.bf16 %v311_v34, %v304_v33  ;;  %v333_v52 = vld [vmem:[%s3968_s1 + $0x8c8] sm:$0xff]  ;;  %v334_v63 = vld [vmem:[%s3968_s1 + $0x8d0] sm:$0xff]  ;;  %v347_v2 = vld [vmem:[%s3968_s1 + $0x938] sm:$0xff] }
  0x3a   :  { %1847 = vmatpush1.bf16.msra.mxu1 %v1846_v44  ;;  %1729 = vmatprep.subr.bf16.mxu0 %v1728_v45  ;;  %v2734_v44 = vld [vmem:[%s3967_s0 + $0x40] sm:$0xff]  ;;  %v1866_v45 = vpack.c.bf16 %v313_v37, %v306_v35  ;;  %v1752_v60 = vpack.c.bf16 %v340_v53, %v333_v52  ;;  %v341_v1 = vld [vmem:[%s3968_s1 + $0x908] sm:$0xff]  ;;  %v346_v11 = vld [vmem:[%s3968_s1 + $0x930] sm:$0xff] }
  0x3b   :  { %1849 = vmatprep.subr.bf16.mxu1 %v1848_v49  ;;  %v320_v49 = vld [vmem:[%s3968_s1 + $0x860] sm:$0xff]  ;;  %v2804_v6 = vld [vmem:[%s3967_s0 + $0x88] sm:$0xff]  ;;  %v363_v19 = vld [vmem:[%s3968_s1 + $0x9b8] sm:$0xff] }
  0x3c   :  { %v1870_v59 = vpack.c.bf16 %v327_v51, %v320_v49  ;;  %v2810_v8 = vld [vmem:[%s3967_s0 + $0x80] sm:$0xff]  ;;  %v353_v12 = vld [vmem:[%s3968_s1 + $0x968] sm:$0xff]  ;;  %v370_v20 = vld [vmem:[%s3968_s1 + $0x9f0] sm:$0xff] }
  0x3d   :  { %1731 = vmatpush1.bf16.msra.mxu0 %v1730_v55  ;;  %v342_v55 = vld [vmem:[%s3968_s1 + $0x910] sm:$0xff]  ;;  %v348_v13 = vld [vmem:[%s3968_s1 + $0x940] sm:$0xff]  ;;  %v2842_v21 = vld [vmem:[%s3967_s0 + $0xa8] sm:$0xff] }
  0x3e   :  { %1851 = vmatpush1.bf16.msra.mxu1 %v1850_v56  ;;  %1733 = vmatprep.subr.bf16.mxu0 %v1732_v57  ;;  %v2766_v56 = vld [vmem:[%s3967_s0 + $0x68] sm:$0xff]  ;;  %v1750_v57 = vpack.c.bf16 %v325_v48, %v318_v47  ;;  %v1872_v0 = vpack.c.bf16 %v342_v55, %v335_v54  ;;  %v2848_v23 = vld [vmem:[%s3967_s0 + $0xa0] sm:$0xff]  ;;  %v367_v27 = vld [vmem:[%s3968_s1 + $0x9d8] sm:$0xff] }
  0x3f   :  { %1853 = vmatprep.subr.bf16.mxu1 %v1852_v61  ;;  %v332_v61 = vld [vmem:[%s3968_s1 + $0x8c0] sm:$0xff]  ;;  %v375_v33 = vld [vmem:[%s3968_s1 + $0xa18] sm:$0xff]  ;;  %v382_v34 = vld [vmem:[%s3968_s1 + $0xa50] sm:$0xff] }
  0x40   :  { %v1754_v7 = vpack.c.bf16 %v339_v62, %v332_v61  ;;  %v360_v26 = vld [vmem:[%s3968_s1 + $0x9a0] sm:$0xff]  ;;  %v377_v35 = vld [vmem:[%s3968_s1 + $0xa28] sm:$0xff]  ;;  %v1764_v41 = vpack.c.bf16 %v382_v34, %v375_v33  ;;  %v383_v48 = vld [vmem:[%s3968_s1 + $0xa58] sm:$0xff] }
  0x41   :  { %1735 = vmatpush1.bf16.msra.mxu0 %v1734_v3  ;;  %v354_v3 = vld [vmem:[%s3968_s1 + $0x970] sm:$0xff]  ;;  %v2880_v37 = vld [vmem:[%s3967_s0 + $0xc8] sm:$0xff]  ;;  %v1762_v38 = vpack.c.bf16 %v367_v27, %v360_v26  ;;  %v2886_v39 = vld [vmem:[%s3967_s0 + $0xc0] sm:$0xff] }
  0x42   :  { %1855 = vmatpush1.bf16.msra.mxu1 %v1854_v4  ;;  %1737 = vmatprep.subr.bf16.mxu0 %v1736_v5  ;;  %v349_v4 = vld [vmem:[%s3968_s1 + $0x948] sm:$0xff]  ;;  %v356_v5 = vld [vmem:[%s3968_s1 + $0x980] sm:$0xff]  ;;  %v1756_v10 = vpack.c.bf16 %v354_v3, %v347_v2  ;;  %v391_v51 = vld [vmem:[%s3968_s1 + $0xa98] sm:$0xff] }
  0x43   :  { %1857 = vmatprep.subr.bf16.mxu1 %v1856_v9  ;;  %v1874_v9 = vpack.c.bf16 %v341_v1, %v334_v63  ;;  %v1876_v14 = vpack.c.bf16 %v356_v5, %v349_v4  ;;  %v389_v49 = vld [vmem:[%s3968_s1 + $0xa88] sm:$0xff]  ;;  %v398_v52 = vld [vmem:[%s3968_s1 + $0xad0] sm:$0xff]  ;;  %v2924_v55 = vld [vmem:[%s3967_s0 + $0xe0] sm:$0xff] }
  0x44   :  { %568 = vmatmul.mubr.f32.vlgmr.msra.gmra.mrb[0].mxu0 %v2660_v15  ;;  %v2918_v53 = vld [vmem:[%s3967_s0 + $0xe8] sm:$0xff]  ;;  %v395_v61 = vld [vmem:[%s3968_s1 + $0xab8] sm:$0xff]  ;;  %v390_v62 = vld [vmem:[%s3968_s1 + $0xa90] sm:$0xff]  ;;  %v1888_v63 = vpack.c.bf16 %v398_v52, %v391_v51 }
  0x45   :  { %1739 = vmatpush1.bf16.msra.mxu0 %v1738_v16  ;;  %818 = vmatmul.mubr.f32.vlgmr.msra.gmra.mrb[0].mxu1 %v2660_v15  ;;  %v355_v16 = vld [vmem:[%s3968_s1 + $0x978] sm:$0xff]  ;;  %v410_v2 = vld [vmem:[%s3968_s1 + $0xb30] sm:$0xff]  ;;  %v405_v3 = vld [vmem:[%s3968_s1 + $0xb08] sm:$0xff] }
  0x46   :  { %1859 = vmatpush1.bf16.msra.mxu1 %v1858_v17  ;;  %1741 = vmatprep.subr.bf16.mxu0 %v1740_v18  ;;  %v361_v17 = vld [vmem:[%s3968_s1 + $0x9a8] sm:$0xff]  ;;  %v368_v18 = vld [vmem:[%s3968_s1 + $0x9e0] sm:$0xff]  ;;  %v1878_v24 = vpack.c.bf16 %v355_v16, %v348_v13  ;;  %v403_v1 = vld [vmem:[%s3968_s1 + $0xaf8] sm:$0xff] }
  0x47   :  { %1861 = vmatprep.subr.bf16.mxu1 %v1860_v22  ;;  %573 = vmatprep.mubr.f32.mxu0 %v2690_v28  ;;  %v1758_v22 = vpack.c.bf16 %v353_v12, %v346_v11  ;;  %v1760_v25 = vpack.c.bf16 %v368_v18, %v361_v17  ;;  %v412_v4 = vld [vmem:[%s3968_s1 + $0xb40] sm:$0xff]  ;;  %v2956_v5 = vld [vmem:[%s3967_s0 + $0x108] sm:$0xff]  ;;  %v1772_v11 = vpack.c.bf16 %v410_v2, %v403_v1  ;;  %v402_v12 = vld [vmem:[%s3968_s1 + $0xaf0] sm:$0xff] }
  0x48   :  { %823 = vmatprep.mubr.f32.mxu1 %v2690_v28  ;;  %574 = vmatmul.mubr.f32.gmra.mrb[2].mxu0 %v2696_v30  ;;  %v409_v13 = vld [vmem:[%s3968_s1 + $0xb28] sm:$0xff]  ;;  %v1892_v16 = vpack.c.bf16 %v412_v4, %v405_v3  ;;  %v411_v17 = vld [vmem:[%s3968_s1 + $0xb38] sm:$0xff]  ;;  %v3000_v26 = vld [vmem:[%s3967_s0 + $0x120] sm:$0xff] }
  0x49   :  { %1743 = vmatpush1.bf16.msra.mxu0 %v1742_v29  ;;  %824 = vmatmul.mubr.f32.gmra.mrb[2].mxu1 %v2696_v30  ;;  %v362_v29 = vld [vmem:[%s3968_s1 + $0x9b0] sm:$0xff]  ;;  %v417_v18 = vld [vmem:[%s3968_s1 + $0xb68] sm:$0xff]  ;;  %v439_v52 = vld [vmem:[%s3968_s1 + $0xc18] sm:$0xff] }
  0x4a   :  { %1863 = vmatpush1.bf16.msra.mxu1 %v1862_v31  ;;  %1745 = vmatprep.subr.bf16.mxu0 %v1744_v32  ;;  %v1880_v31 = vpack.c.bf16 %v370_v20, %v363_v19  ;;  %v369_v32 = vld [vmem:[%s3968_s1 + $0x9e8] sm:$0xff]  ;;  %v424_v19 = vld [vmem:[%s3968_s1 + $0xba0] sm:$0xff]  ;;  %v419_v20 = vld [vmem:[%s3968_s1 + $0xb78] sm:$0xff] }
  0x4b   :  { %1865 = vmatprep.subr.bf16.mxu1 %v1864_v36  ;;  %579 = vmatprep.mubr.f32.mxu0 %v2728_v42  ;;  %v384_v36 = vld [vmem:[%s3968_s1 + $0xa60] sm:$0xff]  ;;  %v1882_v40 = vpack.c.bf16 %v369_v32, %v362_v29  ;;  %v1776_v29 = vpack.c.bf16 %v424_v19, %v417_v18  ;;  %v423_v32 = vld [vmem:[%s3968_s1 + $0xb98] sm:$0xff]  ;;  %v418_v33 = vld [vmem:[%s3968_s1 + $0xb70] sm:$0xff] }
  0x4c   :  { %829 = vmatprep.mubr.f32.mxu1 %v2728_v42  ;;  %580 = vmatmul.mubr.f32.gmra.mrb[4].mxu0 %v2734_v44  ;;  %v1884_v47 = vpack.c.bf16 %v384_v36, %v377_v35  ;;  %v425_v35 = vld [vmem:[%s3968_s1 + $0xba8] sm:$0xff]  ;;  %v431_v36 = vld [vmem:[%s3968_s1 + $0xbd8] sm:$0xff]  ;;  %v446_v2 = vld [vmem:[%s3968_s1 + $0xc50] sm:$0xff] }
  0x4d   :  { %1747 = vmatpush1.bf16.msra.mxu0 %v1746_v43  ;;  %830 = vmatmul.mubr.f32.gmra.mrb[4].mxu1 %v2734_v44  ;;  %v374_v43 = vld [vmem:[%s3968_s1 + $0xa10] sm:$0xff]  ;;  %v451_v1 = vld [vmem:[%s3968_s1 + $0xc78] sm:$0xff]  ;;  %v453_v4 = vld [vmem:[%s3968_s1 + $0xc88] sm:$0xff] }
  0x4e   :  { %1867 = vmatpush1.bf16.msra.mxu1 %v1866_v45  ;;  %1749 = vmatprep.subr.bf16.mxu0 %v1748_v46  ;;  %v381_v45 = vld [vmem:[%s3968_s1 + $0xa48] sm:$0xff]  ;;  %v376_v46 = vld [vmem:[%s3968_s1 + $0xa20] sm:$0xff] }
  0x4f   :  { %1869 = vmatprep.subr.bf16.mxu1 %v1868_v50  ;;  %585 = vmatprep.mubr.f32.mxu0 %v2766_v56  ;;  %v396_v50 = vld [vmem:[%s3968_s1 + $0xac0] sm:$0xff]  ;;  %v1766_v54 = vpack.c.bf16 %v381_v45, %v374_v43  ;;  %v3032_v43 = vld [vmem:[%s3967_s0 + $0x18] sm:$0xff]  ;;  %v465_v18 = vld [vmem:[%s3968_s1 + $0xce8] sm:$0xff] }
  0x50   :  { %835 = vmatprep.mubr.f32.mxu1 %v2766_v56  ;;  %586 = vmatmul.mubr.f32.gmra.mrb[6].mxu0 %v2772_v58  ;;  %v460_v19 = vld [vmem:[%s3968_s1 + $0xcc0] sm:$0xff] }
  0x51   :  { %1751 = vmatpush1.bf16.msra.mxu0 %v1750_v57  ;;  %836 = vmatmul.mubr.f32.gmra.mrb[6].mxu1 %v2772_v58  ;;  %v1886_v57 = vpack.c.bf16 %v383_v48, %v376_v46  ;;  %v1898_v46 = vpack.c.bf16 %v425_v35, %v418_v33  ;;  %v430_v48 = vld [vmem:[%s3968_s1 + $0xbd0] sm:$0xff]  ;;  %v56_v35 = vld [vmem:[%s3968_s1 + $0x20] sm:$0xff] }
  0x52   :  { %1871 = vmatpush1.bf16.msra.mxu1 %v1870_v59  ;;  %1753 = vmatprep.subr.bf16.mxu0 %v1752_v60  ;;  %v1768_v59 = vpack.c.bf16 %v396_v50, %v389_v49  ;;  %v388_v60 = vld [vmem:[%s3968_s1 + $0xa80] sm:$0xff]  ;;  %v437_v49 = vld [vmem:[%s3968_s1 + $0xc08] sm:$0xff] }
  0x53   :  { %1873 = vmatprep.subr.bf16.mxu1 %v1872_v0  ;;  %591 = vmatprep.mubr.f32.mxu0 %v2804_v6  ;;  %v397_v0 = vld [vmem:[%s3968_s1 + $0xac8] sm:$0xff]  ;;  %v432_v50 = vld [vmem:[%s3968_s1 + $0xbe0] sm:$0xff] }
  0x54   :  { %841 = vmatprep.mubr.f32.mxu1 %v2804_v6  ;;  %592 = vmatmul.mubr.f32.gmra.mrb[8].mxu0 %v2810_v8 }
  0x55   :  { %1755 = vmatpush1.bf16.msra.mxu0 %v1754_v7  ;;  %842 = vmatmul.mubr.f32.gmra.mrb[8].mxu1 %v2810_v8  ;;  %v1770_v7 = vpack.c.bf16 %v395_v61, %v388_v60  ;;  %v454_v60 = vld [vmem:[%s3968_s1 + $0xc90] sm:$0xff]  ;;  %v1782_v61 = vpack.c.bf16 %v437_v49, %v430_v48  ;;  %v184_v49 = vld [vmem:[%s3968_s1 + $0x420] sm:$0xff] }
  0x56   :  { %1875 = vmatpush1.bf16.msra.mxu1 %v1874_v9  ;;  %1757 = vmatprep.subr.bf16.mxu0 %v1756_v10  ;;  %v2962_v9 = vld [vmem:[%s3967_s0 + $0x100] sm:$0xff]  ;;  %v1890_v10 = vpack.c.bf16 %v397_v0, %v390_v62  ;;  %v1902_v62 = vpack.c.bf16 %v439_v52, %v432_v50  ;;  %v191_v50 = vld [vmem:[%s3968_s1 + $0x458] sm:$0xff]  ;;  %v77_v52 = vld [vmem:[%s3968_s1 + $0xc8] sm:$0xff] }
  0x57   :  { %1877 = vmatprep.subr.bf16.mxu1 %v1876_v14  ;;  %597 = vmatprep.mubr.f32.mxu0 %v2842_v21  ;;  %v404_v14 = vld [vmem:[%s3968_s1 + $0xb00] sm:$0xff] }
  0x58   :  { %847 = vmatprep.mubr.f32.mxu1 %v2842_v21  ;;  %598 = vmatmul.mubr.f32.gmra.mrb[10].mxu0 %v2848_v23  ;;  %v1894_v27 = vpack.c.bf16 %v411_v17, %v404_v14  ;;  %v444_v0 = vld [vmem:[%s3968_s1 + $0xc40] sm:$0xff]  ;;  %v1906_v14 = vpack.c.bf16 %v453_v4, %v446_v2  ;;  %v458_v17 = vld [vmem:[%s3968_s1 + $0xcb0] sm:$0xff]  ;;  %v205_v4 = vld [vmem:[%s3968_s1 + $0x4c8] sm:$0xff] }
  0x59   :  { %1759 = vmatpush1.bf16.msra.mxu0 %v1758_v22  ;;  %848 = vmatmul.mubr.f32.gmra.mrb[10].mxu1 %v2848_v23  ;;  %v426_v22 = vld [vmem:[%s3968_s1 + $0xbb0] sm:$0xff] }
  0x5a   :  { %1879 = vmatpush1.bf16.msra.mxu1 %v1878_v24  ;;  %1761 = vmatprep.subr.bf16.mxu0 %v1760_v25  ;;  %v2994_v24 = vld [vmem:[%s3967_s0 + $0x128] sm:$0xff]  ;;  %v1774_v25 = vpack.c.bf16 %v409_v13, %v402_v12  ;;  %v1896_v34 = vpack.c.bf16 %v426_v22, %v419_v20  ;;  %v468_v12 = vld [vmem:[%s3968_s1 + $0xd00] sm:$0xff]  ;;  %v1786_v13 = vpack.c.bf16 %v451_v1, %v444_v0  ;;  %v467_v22 = vld [vmem:[%s3968_s1 + $0xcf8] sm:$0xff] }
  0x5b   :  { %1881 = vmatprep.subr.bf16.mxu1 %v1880_v31  ;;  %603 = vmatprep.mubr.f32.mxu0 %v2880_v37  ;;  %v416_v31 = vld [vmem:[%s3968_s1 + $0xb60] sm:$0xff]  ;;  %v1910_v33 = vpack.c.bf16 %v467_v22, %v460_v19  ;;  %v79_v0 = vld [vmem:[%s3968_s1 + $0xd8] sm:$0xff]  ;;  %v3168_v1 = vld [vmem:[%s3967_s0 + $0x30] sm:$0xff] }
  0x5c   :  { %853 = vmatprep.mubr.f32.mxu1 %v2880_v37  ;;  %604 = vmatmul.mubr.f32.gmra.mrb[12].mxu0 %v2886_v39  ;;  %v1778_v45 = vpack.c.bf16 %v423_v32, %v416_v31  ;;  %v177_v31 = vld [vmem:[%s3968_s1 + $0x3e8] sm:$0xff]  ;;  %v1790_v32 = vpack.c.bf16 %v465_v18, %v458_v17  ;;  %v86_v18 = vld [vmem:[%s3968_s1 + $0x110] sm:$0xff] }
  0x5d   :  { %1763 = vmatpush1.bf16.msra.mxu0 %v1762_v38  ;;  %854 = vmatmul.mubr.f32.gmra.mrb[12].mxu1 %v2886_v39  ;;  %v438_v38 = vld [vmem:[%s3968_s1 + $0xc10] sm:$0xff]  ;;  %v93_v19 = vld [vmem:[%s3968_s1 + $0x148] sm:$0xff] }
  0x5e   :  { %1883 = vmatpush1.bf16.msra.mxu1 %v1882_v40  ;;  %1765 = vmatprep.subr.bf16.mxu0 %v1764_v41  ;;  %v433_v40 = vld [vmem:[%s3968_s1 + $0xbe8] sm:$0xff]  ;;  %v440_v41 = vld [vmem:[%s3968_s1 + $0xc20] sm:$0xff] }
  0x5f   :  { %1885 = vmatprep.subr.bf16.mxu1 %v1884_v47  ;;  %609 = vmatprep.mubr.f32.mxu0 %v2918_v53  ;;  %v1780_v47 = vpack.c.bf16 %v438_v38, %v431_v36  ;;  %v1900_v51 = vpack.c.bf16 %v440_v41, %v433_v40  ;;  %v63_v36 = vld [vmem:[%s3968_s1 + $0x58] sm:$0xff]  ;;  %v78_v41 = vld [vmem:[%s3968_s1 + $0xd0] sm:$0xff] }
  0x60   :  { %859 = vmatprep.mubr.f32.mxu1 %v2918_v53  ;;  %610 = vmatmul.mubr.f32.gmra.mrb[14].mxu0 %v2924_v55  ;;  %v71_v38 = vld [vmem:[%s3968_s1 + $0x98] sm:$0xff]  ;;  %v1914_v48 = vpack.c.bf16 %v63_v36, %v56_v35  ;;  %v2042_v35 = vpack.c.bf16 %v93_v19, %v86_v18  ;;  %v120_v36 = vld [vmem:[%s3968_s1 + $0x220] sm:$0xff] }
  0x61   :  { %1767 = vmatpush1.bf16.msra.mxu0 %v1766_v54  ;;  %860 = vmatmul.mubr.f32.gmra.mrb[14].mxu1 %v2924_v55  ;;  %v445_v54 = vld [vmem:[%s3968_s1 + $0xc48] sm:$0xff]  ;;  %v148_v18 = vld [vmem:[%s3968_s1 + $0x300] sm:$0xff] }
  0x62   :  { %1887 = vmatpush1.bf16.msra.mxu1 %v1886_v57  ;;  %1769 = vmatprep.subr.bf16.mxu0 %v1768_v59  ;;  %v452_v57 = vld [vmem:[%s3968_s1 + $0xc80] sm:$0xff]  ;;  %v447_v59 = vld [vmem:[%s3968_s1 + $0xc58] sm:$0xff] }
  0x63   :  { %1889 = vmatprep.subr.bf16.mxu1 %v1888_v63  ;;  %615 = vmatprep.mubr.f32.mxu0 %v2956_v5  ;;  %v1784_v63 = vpack.c.bf16 %v452_v57, %v445_v54  ;;  %v1904_v3 = vpack.c.bf16 %v454_v60, %v447_v59  ;;  %v3149_v54 = vld [vmem:[%s3967_s0 + $0x38] sm:$0xff]  ;;  %v1916_v57 = vpack.c.bf16 %v78_v41, %v71_v38  ;;  %v85_v59 = vld [vmem:[%s3968_s1 + $0x108] sm:$0xff] }
  0x64   :  { %865 = vmatprep.mubr.f32.mxu1 %v2956_v5  ;;  %616 = vmatmul.mubr.f32.gmra.mrb[16].mxu0 %v2962_v9  ;;  %v107_v41 = vld [vmem:[%s3968_s1 + $0x1b8] sm:$0xff] }
  0x65   :  { %1771 = vmatpush1.bf16.msra.mxu0 %v1770_v7  ;;  %866 = vmatmul.mubr.f32.gmra.mrb[16].mxu1 %v2962_v9  ;;  %v459_v7 = vld [vmem:[%s3968_s1 + $0xcb8] sm:$0xff] }
  0x66   :  { %1891 = vmatpush1.bf16.msra.mxu1 %v1890_v10  ;;  %1773 = vmatprep.subr.bf16.mxu0 %v1772_v11  ;;  %v466_v10 = vld [vmem:[%s3968_s1 + $0xcf0] sm:$0xff]  ;;  %v461_v11 = vld [vmem:[%s3968_s1 + $0xcc8] sm:$0xff] }
  0x67   :  { %1893 = vmatprep.subr.bf16.mxu1 %v1892_v16  ;;  %621 = vmatprep.mubr.f32.mxu0 %v2994_v24  ;;  %v1788_v16 = vpack.c.bf16 %v466_v10, %v459_v7  ;;  %v1908_v20 = vpack.c.bf16 %v468_v12, %v461_v11  ;;  %v84_v7 = vld [vmem:[%s3968_s1 + $0x100] sm:$0xff]  ;;  %v91_v10 = vld [vmem:[%s3968_s1 + $0x138] sm:$0xff] }
  0x68   :  { %871 = vmatprep.mubr.f32.mxu1 %v2994_v24  ;;  %622 = vmatmul.mubr.f32.gmra.mrb[18].mxu0 %v3000_v26  ;;  %v3189_v11 = vld [vmem:[%s3967_s0 + $0x58] sm:$0xff]  ;;  %v1922_v22 = vpack.c.bf16 %v91_v10, %v84_v7  ;;  %v126_v10 = vld [vmem:[%s3968_s1 + $0x250] sm:$0xff] }
  0x69   :  { %1775 = vmatpush1.bf16.msra.mxu0 %v1774_v25  ;;  %872 = vmatmul.mubr.f32.gmra.mrb[18].mxu1 %v3000_v26  ;;  %v57_v25 = vld [vmem:[%s3968_s1 + $0x28] sm:$0xff]  ;;  %v247_v7 = vld [vmem:[%s3968_s1 + $0x618] sm:$0xff] }
  0x6a   :  { %1895 = vmatpush1.bf16.msra.mxu1 %v1894_v27  ;;  %1777 = vmatprep.subr.bf16.mxu0 %v1776_v29  ;;  %v64_v27 = vld [vmem:[%s3968_s1 + $0x60] sm:$0xff]  ;;  %v170_v29 = vld [vmem:[%s3968_s1 + $0x3b0] sm:$0xff] }
  0x6b   :  { %1897 = vmatprep.subr.bf16.mxu1 %v1896_v34  ;;  %1570 = vmatprep.mubr.msk.f32.mxu0 %vm472_vm0, %v3032_v43  ;;  %v1912_v34 = vpack.c.bf16 %v64_v27, %v57_v25  ;;  %v2032_v40 = vpack.c.bf16 %v177_v31, %v170_v29  ;;  %v212_v25 = vld [vmem:[%s3968_s1 + $0x500] sm:$0xff]  ;;  %v219_v27 = vld [vmem:[%s3968_s1 + $0x538] sm:$0xff]  ;;  %v98_v29 = vld [vmem:[%s3968_s1 + $0x170] sm:$0xff] }
  0x6c   :  { %1580 = vmatprep.mubr.msk.f32.mxu1 %vm472_vm0, %v3032_v43  ;;  %v105_v31 = vld [vmem:[%s3968_s1 + $0x1a8] sm:$0xff]  ;;  %v2044_v38 = vpack.c.bf16 %v219_v27, %v212_v25  ;;  %v135_v25 = vld [vmem:[%s3968_s1 + $0x298] sm:$0xff]  ;;  %v3328_v27 = vld [vmem:[%s3967_s0 + $0xb0] sm:$0xff] }
  0x6d   :  { %1779 = vmatpush1.bf16.msra.mxu0 %v1778_v45  ;;  %v58_v45 = vld [vmem:[%s3968_s1 + $0x30] sm:$0xff] }
  0x6e   :  { %1899 = vmatpush1.bf16.msra.mxu1 %v1898_v46  ;;  %1781 = vmatprep.subr.bf16.mxu0 %v1780_v47  ;;  %v65_v46 = vld [vmem:[%s3968_s1 + $0x68] sm:$0xff]  ;;  %v3132_v47 = vld [vmem:[%s3967_s0 + $0x10] sm:$0xff] }
  0x6f   :  { %1901 = vmatprep.subr.bf16.mxu1 %v1900_v51  ;;  %v70_v51 = vld [vmem:[%s3968_s1 + $0x90] sm:$0xff]  ;;  %v2034_v60 = vpack.c.bf16 %v65_v46, %v58_v45  ;;  %v1926_v46 = vpack.c.bf16 %v105_v31, %v98_v29 }
  0x70   :  { %v1918_v2 = vpack.c.bf16 %v77_v52, %v70_v51  ;;  %v3248_v45 = vld [vmem:[%s3967_s0 + $0x70] sm:$0xff]  ;;  %v119_v51 = vld [vmem:[%s3968_s1 + $0x218] sm:$0xff] }
  0x71   :  { %1783 = vmatpush1.bf16.msra.mxu0 %v1782_v61  ;;  %v92_v61 = vld [vmem:[%s3968_s1 + $0x140] sm:$0xff]  ;;  %v3269_v52 = vld [vmem:[%s3967_s0 + $0x98] sm:$0xff]  ;;  %v254_v31 = vld [vmem:[%s3968_s1 + $0x650] sm:$0xff] }
  0x72   :  { %1903 = vmatpush1.bf16.msra.mxu1 %v1902_v62  ;;  %1785 = vmatprep.subr.bf16.mxu0 %v1784_v63  ;;  %v2036_v62 = vpack.c.bf16 %v191_v50, %v184_v49  ;;  %v72_v63 = vld [vmem:[%s3968_s1 + $0xa0] sm:$0xff]  ;;  %v1920_v12 = vpack.c.bf16 %v92_v61, %v85_v59  ;;  %v233_v49 = vld [vmem:[%s3968_s1 + $0x5a8] sm:$0xff]  ;;  %v127_v59 = vld [vmem:[%s3968_s1 + $0x258] sm:$0xff] }
  0x73   :  { %1905 = vmatprep.subr.bf16.mxu1 %v1904_v3  ;;  %v198_v3 = vld [vmem:[%s3968_s1 + $0x490] sm:$0xff]  ;;  %v112_v50 = vld [vmem:[%s3968_s1 + $0x1e0] sm:$0xff] }
  0x74   :  { %v2040_v17 = vpack.c.bf16 %v205_v4, %v198_v3  ;;  %v134_v61 = vld [vmem:[%s3968_s1 + $0x290] sm:$0xff]  ;;  %v1930_v3 = vpack.c.bf16 %v119_v51, %v112_v50  ;;  %v240_v4 = vld [vmem:[%s3968_s1 + $0x5e0] sm:$0xff]  ;;  %v149_v50 = vld [vmem:[%s3968_s1 + $0x308] sm:$0xff] }
  0x75   :  { %1787 = vmatpush1.bf16.msra.mxu0 %v1786_v13  ;;  %v99_v13 = vld [vmem:[%s3968_s1 + $0x178] sm:$0xff]  ;;  %v2052_v19 = vpack.c.bf16 %v247_v7, %v240_v4  ;;  %v3368_v51 = vld [vmem:[%s3967_s0 + $0xd0] sm:$0xff]  ;;  %v176_v7 = vld [vmem:[%s3968_s1 + $0x3e0] sm:$0xff] }
  0x76   :  { %1907 = vmatpush1.bf16.msra.mxu1 %v1906_v14  ;;  %1789 = vmatprep.subr.bf16.mxu0 %v1788_v16  ;;  %v2038_v14 = vpack.c.bf16 %v79_v0, %v72_v63  ;;  %v106_v16 = vld [vmem:[%s3968_s1 + $0x1b0] sm:$0xff]  ;;  %v121_v0 = vld [vmem:[%s3968_s1 + $0x228] sm:$0xff] }
  0x77   :  { %1909 = vmatprep.subr.bf16.mxu1 %v1908_v20  ;;  %v3208_v20 = vld [vmem:[%s3967_s0 + $0x50] sm:$0xff] }
  0x78   :  { %v114_v63 = vld [vmem:[%s3968_s1 + $0x1f0] sm:$0xff] }
  0x79   :  { %1791 = vmatpush1.bf16.msra.mxu0 %v1790_v32  ;;  %v3229_v32 = vld [vmem:[%s3967_s0 + $0x78] sm:$0xff] }
  0x7a   :  { %1911 = vmatpush1.bf16.msra.mxu1 %v1910_v33  ;;  %1913 = vmatprep.subr.bf16.mxu0 %v1912_v34  ;;  %v1924_v33 = vpack.c.bf16 %v106_v16, %v99_v13  ;;  %v113_v34 = vld [vmem:[%s3968_s1 + $0x1e8] sm:$0xff]  ;;  %v3309_v13 = vld [vmem:[%s3967_s0 + $0xb8] sm:$0xff] }
  0x7b   :  { %2033 = vmatprep.subr.bf16.mxu1 %v2032_v40  ;;  %v100_v40 = vld [vmem:[%s3968_s1 + $0x180] sm:$0xff]  ;;  %v141_v16 = vld [vmem:[%s3968_s1 + $0x2c8] sm:$0xff] }
  0x7c   :  { %693 = vmatmul.mubr.f32.vlgmr.msra.gmra.mrb[0].mxu0 %v3132_v47 }
  0x7d   :  { %943 = vmatmul.mubr.f32.vlgmr.msra.gmra.mrb[0].mxu1 %v3132_v47  ;;  %1915 = vmatpush1.bf16.msra.mxu0 %v1914_v48  ;;  %v226_v48 = vld [vmem:[%s3968_s1 + $0x570] sm:$0xff] }
  0x7e   :  { %1571 = vmatprep.mubr.msk.f32.mxu0 %vm472_vm0, %v3149_v54  ;;  %1581 = vmatprep.mubr.msk.f32.mxu1 %vm472_vm0, %v3149_v54 }
  0x7f   :  { %1917 = vmatprep.subr.bf16.mxu0 %v1916_v57  ;;  %2035 = vmatpush3.bf16.msra.mxu1 %v2034_v60  ;;  %v1928_v57 = vpack.c.bf16 %v120_v36, %v113_v34  ;;  %v2046_v60 = vpack.c.bf16 %v107_v41, %v100_v40  ;;  %v140_v34 = vld [vmem:[%s3968_s1 + $0x2c0] sm:$0xff]  ;;  %v3349_v36 = vld [vmem:[%s3967_s0 + $0xd8] sm:$0xff] }
  0x80   :  { %699 = vmatmul.mubr.f32.gmra.mrb[2].mxu0 %v3168_v1  ;;  %2037 = vmatprep.subr.bf16.mxu1 %v2036_v62  ;;  %v2048_v62 = vpack.c.bf16 %v233_v49, %v226_v48  ;;  %v155_v40 = vld [vmem:[%s3968_s1 + $0x338] sm:$0xff]  ;;  %v142_v49 = vld [vmem:[%s3968_s1 + $0x2d0] sm:$0xff] }
  0x81   :  { %949 = vmatmul.mubr.f32.gmra.mrb[2].mxu1 %v3168_v1  ;;  %1919 = vmatpush1.bf16.msra.mxu0 %v1918_v2  ;;  %v3288_v2 = vld [vmem:[%s3967_s0 + $0x90] sm:$0xff]  ;;  %v2058_v4 = vpack.c.bf16 %v149_v50, %v142_v49 }
  0x82   :  { %1572 = vmatprep.mubr.msk.f32.mxu0 %vm472_vm0, %v3189_v11  ;;  %1582 = vmatprep.mubr.msk.f32.mxu1 %vm472_vm0, %v3189_v11 }
  0x83   :  { %1921 = vmatprep.subr.bf16.mxu0 %v1920_v12  ;;  %2039 = vmatpush3.bf16.msra.mxu1 %v2038_v14  ;;  %v133_v12 = vld [vmem:[%s3968_s1 + $0x288] sm:$0xff]  ;;  %v1932_v14 = vpack.c.bf16 %v134_v61, %v127_v59  ;;  %v268_v59 = vld [vmem:[%s3968_s1 + $0x6c0] sm:$0xff]  ;;  %v154_v61 = vld [vmem:[%s3968_s1 + $0x330] sm:$0xff] }
  0x84   :  { %705 = vmatmul.mubr.f32.gmra.mrb[4].mxu0 %v3208_v20  ;;  %2041 = vmatprep.subr.bf16.mxu1 %v2040_v17  ;;  %v2050_v17 = vpack.c.bf16 %v121_v0, %v114_v63  ;;  %v1934_v29 = vpack.c.bf16 %v133_v12, %v126_v10  ;;  %v3389_v63 = vld [vmem:[%s3967_s0 + $0xf8] sm:$0xff]  ;;  %v156_v12 = vld [vmem:[%s3968_s1 + $0x340] sm:$0xff] }
  0x85   :  { %955 = vmatmul.mubr.f32.gmra.mrb[4].mxu1 %v3208_v20  ;;  %1923 = vmatpush1.bf16.msra.mxu0 %v1922_v22  ;;  %v128_v22 = vld [vmem:[%s3968_s1 + $0x260] sm:$0xff] }
  0x86   :  { %1573 = vmatprep.mubr.msk.f32.mxu0 %vm472_vm0, %v3229_v32  ;;  %1583 = vmatprep.mubr.msk.f32.mxu1 %vm472_vm0, %v3229_v32  ;;  %v2054_v41 = vpack.c.bf16 %v135_v25, %v128_v22  ;;  %v3423_v22 = vld [vmem:[%s3967_s0 + $0x118] sm:$0xff] }
  0x87   :  { %1925 = vmatprep.subr.bf16.mxu0 %v1924_v33  ;;  %2043 = vmatpush3.bf16.msra.mxu1 %v2042_v35  ;;  %v261_v33 = vld [vmem:[%s3968_s1 + $0x688] sm:$0xff]  ;;  %v147_v35 = vld [vmem:[%s3968_s1 + $0x2f8] sm:$0xff] }
  0x88   :  { %711 = vmatmul.mubr.f32.gmra.mrb[6].mxu0 %v3248_v45  ;;  %2045 = vmatprep.subr.bf16.mxu1 %v2044_v38  ;;  %v1936_v38 = vpack.c.bf16 %v148_v18, %v141_v16  ;;  %v2056_v48 = vpack.c.bf16 %v261_v33, %v254_v31  ;;  %v3408_v16 = vld [vmem:[%s3967_s0 + $0xf0] sm:$0xff]  ;;  %v168_v18 = vld [vmem:[%s3968_s1 + $0x3a0] sm:$0xff]  ;;  %v183_v31 = vld [vmem:[%s3968_s1 + $0x418] sm:$0xff] }
  0x89   :  { %961 = vmatmul.mubr.f32.gmra.mrb[6].mxu1 %v3248_v45  ;;  %1927 = vmatpush1.bf16.msra.mxu0 %v1926_v46  ;;  %v162_v46 = vld [vmem:[%s3968_s1 + $0x370] sm:$0xff] }
  0x8a   :  { %1574 = vmatprep.mubr.msk.f32.mxu0 %vm472_vm0, %v3269_v52  ;;  %1584 = vmatprep.mubr.msk.f32.mxu1 %vm472_vm0, %v3269_v52  ;;  %v1940_v0 = vpack.c.bf16 %v162_v46, %v155_v40  ;;  %v190_v33 = vld [vmem:[%s3968_s1 + $0x450] sm:$0xff]  ;;  %v189_v40 = vld [vmem:[%s3968_s1 + $0x448] sm:$0xff] }
  0x8b   :  { %1929 = vmatprep.subr.bf16.mxu0 %v1928_v57  ;;  %2047 = vmatpush3.bf16.msra.mxu1 %v2046_v60  ;;  %v1938_v57 = vpack.c.bf16 %v147_v35, %v140_v34  ;;  %v275_v60 = vld [vmem:[%s3968_s1 + $0x6f8] sm:$0xff]  ;;  %v3436_v34 = vld [vmem:[%s3967_s0 + $0x110] sm:$0xff] }
  0x8c   :  { %717 = vmatmul.mubr.f32.gmra.mrb[8].mxu0 %v3288_v2  ;;  %2049 = vmatprep.subr.bf16.mxu1 %v2048_v62  ;;  %v161_v62 = vld [vmem:[%s3968_s1 + $0x368] sm:$0xff]  ;;  %v2060_v10 = vpack.c.bf16 %v275_v60, %v268_v59 }
  0x8d   :  { %967 = vmatmul.mubr.f32.gmra.mrb[8].mxu1 %v3288_v2  ;;  %1931 = vmatpush1.bf16.msra.mxu0 %v1930_v3  ;;  %v169_v3 = vld [vmem:[%s3968_s1 + $0x3a8] sm:$0xff] }
  0x8e   :  { %1575 = vmatprep.mubr.msk.f32.mxu0 %vm472_vm0, %v3309_v13  ;;  %1585 = vmatprep.mubr.msk.f32.mxu1 %vm472_vm0, %v3309_v13  ;;  %v1944_v25 = vpack.c.bf16 %v176_v7, %v169_v3 }
  0x8f   :  { %1933 = vmatprep.subr.bf16.mxu0 %v1932_v14  ;;  %2051 = vmatpush3.bf16.msra.mxu1 %v2050_v17  ;;  %v163_v14 = vld [vmem:[%s3968_s1 + $0x378] sm:$0xff]  ;;  %v1942_v17 = vpack.c.bf16 %v161_v62, %v154_v61 }
  0x90   :  { %723 = vmatmul.mubr.f32.gmra.mrb[10].mxu0 %v3328_v27  ;;  %2053 = vmatprep.subr.bf16.mxu1 %v2052_v19  ;;  %v175_v19 = vld [vmem:[%s3968_s1 + $0x3d8] sm:$0xff] }
  0x91   :  { %973 = vmatmul.mubr.f32.gmra.mrb[10].mxu1 %v3328_v27  ;;  %1935 = vmatpush1.bf16.msra.mxu0 %v1934_v29  ;;  %v2062_v29 = vpack.c.bf16 %v163_v14, %v156_v12  ;;  %v1946_v35 = vpack.c.bf16 %v175_v19, %v168_v18 }
  0x92   :  { %1576 = vmatprep.mubr.msk.f32.mxu0 %vm472_vm0, %v3349_v36  ;;  %1586 = vmatprep.mubr.msk.f32.mxu1 %vm472_vm0, %v3349_v36 }
  0x93   :  { %1937 = vmatprep.subr.bf16.mxu0 %v1936_v38  ;;  %2055 = vmatpush3.bf16.msra.mxu1 %v2054_v41  ;;  %v182_v38 = vld [vmem:[%s3968_s1 + $0x410] sm:$0xff] }
  0x94   :  { %729 = vmatmul.mubr.f32.gmra.mrb[12].mxu0 %v3368_v51  ;;  %2057 = vmatprep.subr.bf16.mxu1 %v2056_v48 }
  0x95   :  { %979 = vmatmul.mubr.f32.gmra.mrb[12].mxu1 %v3368_v51  ;;  %1939 = vmatpush1.bf16.msra.mxu0 %v1938_v57 }
  0x96   :  { %1577 = vmatprep.mubr.msk.f32.mxu0 %vm472_vm0, %v3389_v63  ;;  %1587 = vmatprep.mubr.msk.f32.mxu1 %vm472_vm0, %v3389_v63 }
  0x97   :  { %1941 = vmatprep.subr.bf16.mxu0 %v1940_v0  ;;  %2059 = vmatpush3.bf16.msra.mxu1 %v2058_v4 }
  0x98   :  { %735 = vmatmul.mubr.f32.gmra.mrb[14].mxu0 %v3408_v16  ;;  %2061 = vmatprep.subr.bf16.mxu1 %v2060_v10 }
  0x99   :  { %985 = vmatmul.mubr.f32.gmra.mrb[14].mxu1 %v3408_v16  ;;  %1943 = vmatpush1.bf16.msra.mxu0 %v1942_v17 }
  0x9a   :  { %1578 = vmatprep.mubr.msk.f32.mxu0 %vm472_vm0, %v3423_v22  ;;  %1588 = vmatprep.mubr.msk.f32.mxu1 %vm472_vm0, %v3423_v22 }
  0x9b   :  { %7 = vsyncpa [#allocation3], 0  ;;  %1945 = vmatprep.subr.bf16.mxu0 %v1944_v25  ;;  %v3451_v41 = vld [vmem:[%s3967_s0 + $0x138] sm:$0xff]  ;;  %v1948_v46 = vpack.c.bf16 %v190_v33, %v183_v31  ;;  %2063 = vmatpush3.bf16.msra.mxu1 %v2062_v29  ;;  %v197_v48 = vld [vmem:[%s3968_s1 + $0x488] sm:$0xff]  ;;  %v2215_v50 = vmov 0.0|0.0   ;;  %v1950_v59 = vpack.c.bf16 %v189_v40, %v182_v38  ;;  %vm1489_vm1 = vcmask 130048  }
  0x9c   :  { %v204_v49 = vld [vmem:[%s3968_s1 + $0x4c0] sm:$0xff]  ;;  %741 = vmatmul.mubr.f32.gmra.mrb[16].mxu0 %v3436_v34  ;;  %2064 = vmatprep.subr.bf16.mxu1 %v2215_v50  ;;  %v3465_v57 = vld [vmem:[%s3967_s0 + $0x130] sm:$0xff]  ;;  %v203_v0 = vld [vmem:[%s3968_s1 + $0x4b8] sm:$0xff] }
  0x9d   :  { %991 = vmatmul.mubr.f32.gmra.mrb[16].mxu1 %v3436_v34  ;;  %1947 = vmatpush1.bf16.msra.mxu0 %v1946_v35  ;;  %v1952_v60 = vpack.c.bf16 %v204_v49, %v197_v48  ;;  %v282_v61 = vld [vmem:[%s3968_s1 + $0x730] sm:$0xff]  ;;  %v196_v62 = vld [vmem:[%s3968_s1 + $0x480] sm:$0xff]  ;;  %v289_v3 = vld [vmem:[%s3968_s1 + $0x768] sm:$0xff] }
  0x9e   :  { %1579 = vmatprep.mubr.msk.f32.mxu0 %vm472_vm0, %v3451_v41  ;;  %1589 = vmatprep.mubr.msk.f32.mxu1 %vm472_vm0, %v3451_v41  ;;  %v211_v4 = vld [vmem:[%s3968_s1 + $0x4f8] sm:$0xff]  ;;  %v218_v7 = vld [vmem:[%s3968_s1 + $0x530] sm:$0xff]  ;;  %v1954_v10 = vpack.c.bf16 %v203_v0, %v196_v62  ;;  %v2170_v12 = vld [vmem:[%s3967_s0 + $0x8] sm:$0xff]  ;;  %v2065_v14 = vpack.c.bf16 %v289_v3, %v282_v61 }
  0x9f   :  { %1949 = vmatprep.subr.bf16.mxu0 %v1948_v46  ;;  %v1956_v17 = vpack.c.bf16 %v218_v7, %v211_v4  ;;  %v296_v18 = vld [vmem:[%s3968_s1 + $0x7a0] sm:$0xff]  ;;  %v210_v19 = vld [vmem:[%s3968_s1 + $0x4f0] sm:$0xff]  ;;  %v217_v25 = vld [vmem:[%s3968_s1 + $0x528] sm:$0xff] }
  0xa0   :  { %747 = vmatmul.mubr.f32.gmra.mrb[18].mxu0 %v3465_v57  ;;  %v303_v29 = vld [vmem:[%s3968_s1 + $0x7d8] sm:$0xff]  ;;  %v225_v31 = vld [vmem:[%s3968_s1 + $0x568] sm:$0xff]  ;;  %v232_v33 = vld [vmem:[%s3968_s1 + $0x5a0] sm:$0xff]  ;;  %v1958_v35 = vpack.c.bf16 %v217_v25, %v210_v19 }
  0xa1   :  { %997 = vmatmul.mubr.f32.gmra.mrb[18].mxu1 %v3465_v57  ;;  %1951 = vmatpush1.bf16.msra.mxu0 %v1950_v59  ;;  %v2068_v38 = vpack.c.bf16 %v303_v29, %v296_v18  ;;  %v1960_v40 = vpack.c.bf16 %v232_v33, %v225_v31  ;;  %v310_v46 = vld [vmem:[%s3968_s1 + $0x810] sm:$0xff]  ;;  %v224_v48 = vld [vmem:[%s3968_s1 + $0x560] sm:$0xff]  ;;  %v231_v49 = vld [vmem:[%s3968_s1 + $0x598] sm:$0xff] }
  0xa2   :  { %1317 = vmatprep.mubr.f32.mxu1 %v2170_v12  ;;  %1953 = vmatprep.subr.bf16.mxu0 %v1952_v60  ;;  %v239_v59 = vld [vmem:[%s3968_s1 + $0x5d8] sm:$0xff]  ;;  %v246_v60 = vld [vmem:[%s3968_s1 + $0x610] sm:$0xff]  ;;  %v1962_v61 = vpack.c.bf16 %v231_v49, %v224_v48  ;;  %v324_v3 = vld [vmem:[%s3968_s1 + $0x880] sm:$0xff] }
  0xa3   :  { %1067 = vmatprep.mubr.f32.mxu0 %v2170_v12  ;;  %v1964_v0 = vpack.c.bf16 %v246_v60, %v239_v59  ;;  %v238_v4 = vld [vmem:[%s3968_s1 + $0x5d0] sm:$0xff]  ;;  %v253_v7 = vld [vmem:[%s3968_s1 + $0x648] sm:$0xff]  ;;  %v252_v19 = vld [vmem:[%s3968_s1 + $0x640] sm:$0xff] }
  0xa4   :  { %v338_v18 = vld [vmem:[%s3968_s1 + $0x8f0] sm:$0xff]  ;;  %v267_v25 = vld [vmem:[%s3968_s1 + $0x6b8] sm:$0xff]  ;;  %v288_v48 = vld [vmem:[%s3968_s1 + $0x760] sm:$0xff] }
  0xa5   :  { %1318 = vmatmul.mubr.f32.vlgmr.msra.gmra.mrb[20].mxu1 %v2660_v15  ;;  %1955 = vmatpush1.bf16.msra.mxu0 %v1954_v10  ;;  %v317_v15 = vld [vmem:[%s3968_s1 + $0x848] sm:$0xff]  ;;  %v260_v10 = vld [vmem:[%s3968_s1 + $0x680] sm:$0xff]  ;;  %v274_v29 = vld [vmem:[%s3968_s1 + $0x6f0] sm:$0xff] }
  0xa6   :  { %2066 = vmatpush1.bf16.msra.mxu1 %v2065_v14  ;;  %1957 = vmatprep.subr.bf16.mxu0 %v1956_v17  ;;  %v2071_v62 = vpack.c.bf16 %v317_v15, %v310_v46  ;;  %v1968_v17 = vpack.c.bf16 %v260_v10, %v253_v7  ;;  %v281_v46 = vld [vmem:[%s3968_s1 + $0x728] sm:$0xff]  ;;  %v366_v60 = vld [vmem:[%s3968_s1 + $0x9d0] sm:$0xff] }
  0xa7   :  { %2067 = vmatprep.subr.bf16.mxu1 %v2215_v50  ;;  %1322 = vmatprep.mubr.f32.mxu1 %v2690_v28  ;;  %v245_v28 = vld [vmem:[%s3968_s1 + $0x608] sm:$0xff]  ;;  %v1976_v59 = vpack.c.bf16 %v288_v48, %v281_v46  ;;  %v294_v7 = vld [vmem:[%s3968_s1 + $0x790] sm:$0xff]  ;;  %v344_v46 = vld [vmem:[%s3968_s1 + $0x920] sm:$0xff] }
  0xa8   :  { %v1966_v12 = vpack.c.bf16 %v245_v28, %v238_v4  ;;  %v309_v10 = vld [vmem:[%s3968_s1 + $0x808] sm:$0xff]  ;;  %v2173_v48 = vld [vmem:[%s3967_s0 + $0x20] sm:$0xff] }
  0xa9   :  { %1959 = vmatpush1.bf16.msra.mxu0 %v1958_v35  ;;  %1323 = vmatmul.mubr.f32.gmra.mrb[22].mxu1 %v2696_v30  ;;  %v331_v30 = vld [vmem:[%s3968_s1 + $0x8b8] sm:$0xff]  ;;  %v1972_v35 = vpack.c.bf16 %v274_v29, %v267_v25  ;;  %v330_v29 = vld [vmem:[%s3968_s1 + $0x8b0] sm:$0xff] }
  0xaa   :  { %2069 = vmatpush1.bf16.msra.mxu1 %v2068_v38  ;;  %1961 = vmatprep.subr.bf16.mxu0 %v1960_v40  ;;  %v2074_v14 = vpack.c.bf16 %v331_v30, %v324_v3  ;;  %v352_v38 = vld [vmem:[%s3968_s1 + $0x960] sm:$0xff]  ;;  %v266_v40 = vld [vmem:[%s3968_s1 + $0x6b0] sm:$0xff]  ;;  %v323_v25 = vld [vmem:[%s3968_s1 + $0x878] sm:$0xff] }
  0xab   :  { %2070 = vmatprep.subr.bf16.mxu1 %v2215_v50  ;;  %1327 = vmatprep.mubr.f32.mxu1 %v2728_v42  ;;  %v259_v42 = vld [vmem:[%s3968_s1 + $0x678] sm:$0xff]  ;;  %v380_v30 = vld [vmem:[%s3968_s1 + $0xa40] sm:$0xff] }
  0xac   :  { %v1970_v31 = vpack.c.bf16 %v259_v42, %v252_v19  ;;  %v394_v42 = vld [vmem:[%s3968_s1 + $0xab0] sm:$0xff] }
  0xad   :  { %1963 = vmatpush1.bf16.msra.mxu0 %v1962_v61  ;;  %1328 = vmatmul.mubr.f32.gmra.mrb[24].mxu1 %v2734_v44  ;;  %v345_v44 = vld [vmem:[%s3968_s1 + $0x928] sm:$0xff]  ;;  %v280_v61 = vld [vmem:[%s3968_s1 + $0x720] sm:$0xff] }
  0xae   :  { %2072 = vmatpush1.bf16.msra.mxu1 %v2071_v62  ;;  %1965 = vmatprep.subr.bf16.mxu0 %v1964_v0  ;;  %v2077_v33 = vpack.c.bf16 %v345_v44, %v338_v18  ;;  %v295_v62 = vld [vmem:[%s3968_s1 + $0x798] sm:$0xff]  ;;  %v302_v0 = vld [vmem:[%s3968_s1 + $0x7d0] sm:$0xff] }
  0xaf   :  { %2073 = vmatprep.subr.bf16.mxu1 %v2215_v50  ;;  %1332 = vmatprep.mubr.f32.mxu1 %v2766_v56  ;;  %v273_v56 = vld [vmem:[%s3968_s1 + $0x6e8] sm:$0xff]  ;;  %v1980_v28 = vpack.c.bf16 %v302_v0, %v295_v62  ;;  %v315_v44 = vld [vmem:[%s3968_s1 + $0x838] sm:$0xff]  ;;  %v358_v62 = vld [vmem:[%s3968_s1 + $0x990] sm:$0xff] }
  0xb0   :  { %v1974_v49 = vpack.c.bf16 %v273_v56, %v266_v40  ;;  %v408_v40 = vld [vmem:[%s3968_s1 + $0xb20] sm:$0xff]  ;;  %v329_v56 = vld [vmem:[%s3968_s1 + $0x8a8] sm:$0xff] }
  0xb1   :  { %1967 = vmatpush1.bf16.msra.mxu0 %v1966_v12  ;;  %1333 = vmatmul.mubr.f32.gmra.mrb[26].mxu1 %v2772_v58  ;;  %v359_v58 = vld [vmem:[%s3968_s1 + $0x998] sm:$0xff]  ;;  %v316_v12 = vld [vmem:[%s3968_s1 + $0x840] sm:$0xff] }
  0xb2   :  { %2075 = vmatpush1.bf16.msra.mxu1 %v2074_v14  ;;  %1969 = vmatprep.subr.bf16.mxu0 %v1968_v17  ;;  %v2080_v15 = vpack.c.bf16 %v359_v58, %v352_v38  ;;  %v2171_v14 = vld [vmem:[%s3967_s0] sm:$0xff]  ;;  %v1984_v19 = vpack.c.bf16 %v316_v12, %v309_v10  ;;  %v1988_v38 = vpack.c.bf16 %v330_v29, %v323_v25  ;;  %v337_v58 = vld [vmem:[%s3968_s1 + $0x8e8] sm:$0xff]  ;;  %v386_v25 = vld [vmem:[%s3968_s1 + $0xa70] sm:$0xff] }
  0xb3   :  { %2076 = vmatprep.subr.bf16.mxu1 %v2215_v50  ;;  %1337 = vmatprep.mubr.f32.mxu1 %v2804_v6  ;;  %v287_v6 = vld [vmem:[%s3968_s1 + $0x758] sm:$0xff]  ;;  %v2175_v0 = vld [vmem:[%s3967_s0 + $0x40] sm:$0xff] }
  0xb4   :  { %v1978_v3 = vpack.c.bf16 %v287_v6, %v280_v61  ;;  %v422_v61 = vld [vmem:[%s3968_s1 + $0xb90] sm:$0xff]  ;;  %v343_v6 = vld [vmem:[%s3968_s1 + $0x918] sm:$0xff]  ;;  %v372_v10 = vld [vmem:[%s3968_s1 + $0xa00] sm:$0xff] }
  0xb5   :  { %1971 = vmatpush1.bf16.msra.mxu0 %v1970_v31  ;;  %1338 = vmatmul.mubr.f32.gmra.mrb[28].mxu1 %v2810_v8  ;;  %v373_v8 = vld [vmem:[%s3968_s1 + $0xa08] sm:$0xff]  ;;  %v2177_v12 = vld [vmem:[%s3967_s0 + $0x60] sm:$0xff] }
  0xb6   :  { %2078 = vmatpush1.bf16.msra.mxu1 %v2077_v33  ;;  %1973 = vmatprep.subr.bf16.mxu0 %v1972_v35  ;;  %v2083_v4 = vpack.c.bf16 %v373_v8, %v366_v60  ;;  %v2172_v31 = vld [vmem:[%s3967_s0 + $0x28] sm:$0xff]  ;;  %v1992_v60 = vpack.c.bf16 %v344_v46, %v337_v58  ;;  %v351_v8 = vld [vmem:[%s3968_s1 + $0x958] sm:$0xff]  ;;  %v2179_v29 = vld [vmem:[%s3967_s0 + $0x80] sm:$0xff] }
  0xb7   :  { %2079 = vmatprep.subr.bf16.mxu1 %v2215_v50  ;;  %1342 = vmatprep.mubr.f32.mxu1 %v2842_v21  ;;  %v301_v21 = vld [vmem:[%s3968_s1 + $0x7c8] sm:$0xff]  ;;  %v400_v46 = vld [vmem:[%s3968_s1 + $0xae0] sm:$0xff] }
  0xb8   :  { %v1982_v17 = vpack.c.bf16 %v301_v21, %v294_v7  ;;  %v436_v7 = vld [vmem:[%s3968_s1 + $0xc00] sm:$0xff]  ;;  %v357_v21 = vld [vmem:[%s3968_s1 + $0x988] sm:$0xff] }
  0xb9   :  { %1975 = vmatpush1.bf16.msra.mxu0 %v1974_v49  ;;  %1343 = vmatmul.mubr.f32.gmra.mrb[30].mxu1 %v2848_v23  ;;  %v387_v23 = vld [vmem:[%s3968_s1 + $0xa78] sm:$0xff]  ;;  %v2174_v49 = vld [vmem:[%s3967_s0 + $0x48] sm:$0xff] }
  0xba   :  { %2081 = vmatpush1.bf16.msra.mxu1 %v2080_v15  ;;  %1977 = vmatprep.subr.bf16.mxu0 %v1976_v59  ;;  %v2086_v18 = vpack.c.bf16 %v387_v23, %v380_v30  ;;  %v1996_v30 = vpack.c.bf16 %v358_v62, %v351_v8  ;;  %v365_v23 = vld [vmem:[%s3968_s1 + $0x9c8] sm:$0xff]  ;;  %v2183_v8 = vld [vmem:[%s3967_s0 + $0xc0] sm:$0xff] }
  0xbb   :  { %2082 = vmatprep.subr.bf16.mxu1 %v2215_v50  ;;  %1347 = vmatprep.mubr.f32.mxu1 %v2880_v37  ;;  %v308_v37 = vld [vmem:[%s3968_s1 + $0x800] sm:$0xff]  ;;  %v393_v58 = vld [vmem:[%s3968_s1 + $0xaa8] sm:$0xff] }
  0xbc   :  { %1068 = vmatmul.mubr.f32.vlgmr.msra.gmra.mrb[20].mxu0 %v2171_v14  ;;  %v1986_v33 = vpack.c.bf16 %v315_v44, %v308_v37  ;;  %v2178_v14 = vld [vmem:[%s3967_s0 + $0x88] sm:$0xff]  ;;  %v364_v37 = vld [vmem:[%s3968_s1 + $0x9c0] sm:$0xff] }
  0xbd   :  { %1979 = vmatpush1.bf16.msra.mxu0 %v1978_v3  ;;  %1348 = vmatmul.mubr.f32.gmra.mrb[32].mxu1 %v2886_v39  ;;  %v401_v39 = vld [vmem:[%s3968_s1 + $0xae8] sm:$0xff] }
  0xbe   :  { %2084 = vmatpush1.bf16.msra.mxu1 %v2083_v4  ;;  %1981 = vmatprep.subr.bf16.mxu0 %v1980_v28  ;;  %v2089_v35 = vpack.c.bf16 %v401_v39, %v394_v42  ;;  %v2176_v3 = vld [vmem:[%s3967_s0 + $0x68] sm:$0xff]  ;;  %v450_v42 = vld [vmem:[%s3968_s1 + $0xc70] sm:$0xff]  ;;  %v379_v39 = vld [vmem:[%s3968_s1 + $0xa38] sm:$0xff] }
  0xbf   :  { %2085 = vmatprep.subr.bf16.mxu1 %v2215_v50  ;;  %1352 = vmatprep.mubr.f32.mxu1 %v2918_v53  ;;  %v322_v53 = vld [vmem:[%s3968_s1 + $0x870] sm:$0xff]  ;;  %v457_v44 = vld [vmem:[%s3968_s1 + $0xca8] sm:$0xff] }
  0xc0   :  { %1073 = vmatprep.mubr.f32.mxu0 %v2172_v31  ;;  %v1990_v15 = vpack.c.bf16 %v329_v56, %v322_v53  ;;  %v2180_v31 = vld [vmem:[%s3967_s0 + $0xa8] sm:$0xff]  ;;  %v378_v53 = vld [vmem:[%s3968_s1 + $0xa30] sm:$0xff] }
  0xc1   :  { %1983 = vmatpush1.bf16.msra.mxu0 %v1982_v17  ;;  %1353 = vmatmul.mubr.f32.gmra.mrb[34].mxu1 %v2924_v55  ;;  %v415_v55 = vld [vmem:[%s3968_s1 + $0xb58] sm:$0xff]  ;;  %v385_v56 = vld [vmem:[%s3968_s1 + $0xa68] sm:$0xff] }
  0xc2   :  { %2087 = vmatpush1.bf16.msra.mxu1 %v2086_v18  ;;  %1985 = vmatprep.subr.bf16.mxu0 %v1984_v19  ;;  %v2092_v59 = vpack.c.bf16 %v415_v55, %v408_v40  ;;  %v2000_v19 = vpack.c.bf16 %v372_v10, %v365_v23  ;;  %v464_v40 = vld [vmem:[%s3968_s1 + $0xce0] sm:$0xff]  ;;  %v471_v55 = vld [vmem:[%s3968_s1 + $0xd18] sm:$0xff]  ;;  %v2184_v62 = vld [vmem:[%s3967_s0 + $0xe8] sm:$0xff] }
  0xc3   :  { %2088 = vmatprep.subr.bf16.mxu1 %v2215_v50  ;;  %1074 = vmatmul.mubr.f32.gmra.mrb[22].mxu0 %v2173_v48  ;;  %v2181_v48 = vld [vmem:[%s3967_s0 + $0xa0] sm:$0xff]  ;;  %v427_v10 = vld [vmem:[%s3968_s1 + $0xbb8] sm:$0xff] }
  0xc4   :  { %1357 = vmatprep.mubr.f32.mxu1 %v2956_v5  ;;  %1079 = vmatprep.mubr.f32.mxu0 %v2174_v49  ;;  %v336_v5 = vld [vmem:[%s3968_s1 + $0x8e0] sm:$0xff]  ;;  %v2182_v49 = vld [vmem:[%s3967_s0 + $0xc8] sm:$0xff] }
  0xc5   :  { %1987 = vmatpush1.bf16.msra.mxu0 %v1986_v33  ;;  %1358 = vmatmul.mubr.f32.gmra.mrb[36].mxu1 %v2962_v9  ;;  %v429_v9 = vld [vmem:[%s3968_s1 + $0xbc8] sm:$0xff]  ;;  %v1994_v4 = vpack.c.bf16 %v343_v6, %v336_v5  ;;  %v399_v5 = vld [vmem:[%s3968_s1 + $0xad8] sm:$0xff]  ;;  %v420_v23 = vld [vmem:[%s3968_s1 + $0xb80] sm:$0xff] }
  0xc6   :  { %2090 = vmatpush1.bf16.msra.mxu1 %v2089_v35  ;;  %1989 = vmatprep.subr.bf16.mxu0 %v1988_v38  ;;  %v2095_v28 = vpack.c.bf16 %v429_v9, %v422_v61  ;;  %v2101_v35 = vpack.c.bf16 %v457_v44, %v450_v42  ;;  %v2004_v38 = vpack.c.bf16 %v386_v25, %v379_v39  ;;  %v392_v61 = vld [vmem:[%s3968_s1 + $0xaa0] sm:$0xff]  ;;  %v407_v6 = vld [vmem:[%s3968_s1 + $0xb18] sm:$0xff]  ;;  %v414_v9 = vld [vmem:[%s3968_s1 + $0xb50] sm:$0xff] }
  0xc7   :  { %2091 = vmatprep.subr.bf16.mxu1 %v2215_v50  ;;  %1080 = vmatmul.mubr.f32.gmra.mrb[24].mxu0 %v2175_v0  ;;  %v2012_v0 = vpack.c.bf16 %v414_v9, %v407_v6  ;;  %v449_v44 = vld [vmem:[%s3968_s1 + $0xc68] sm:$0xff]  ;;  %v456_v39 = vld [vmem:[%s3968_s1 + $0xca0] sm:$0xff] }
  0xc8   :  { %1362 = vmatprep.mubr.f32.mxu1 %v2994_v24  ;;  %1085 = vmatprep.mubr.f32.mxu0 %v2176_v3  ;;  %v350_v24 = vld [vmem:[%s3968_s1 + $0x950] sm:$0xff]  ;;  %v2189_v25 = vld [vmem:[%s3967_s0 + $0x120] sm:$0xff] }
  0xc9   :  { %1991 = vmatpush1.bf16.msra.mxu0 %v1990_v15  ;;  %1363 = vmatmul.mubr.f32.gmra.mrb[38].mxu1 %v3000_v26  ;;  %v443_v26 = vld [vmem:[%s3968_s1 + $0xc38] sm:$0xff]  ;;  %v1998_v17 = vpack.c.bf16 %v357_v21, %v350_v24  ;;  %v2006_v15 = vpack.c.bf16 %v385_v56, %v378_v53  ;;  %v406_v3 = vld [vmem:[%s3968_s1 + $0xb10] sm:$0xff]  ;;  %v2186_v24 = vld [vmem:[%s3967_s0 + $0x108] sm:$0xff] }
  0xca   :  { %2093 = vmatpush1.bf16.msra.mxu1 %v2092_v59  ;;  %1993 = vmatprep.subr.bf16.mxu0 %v1992_v60  ;;  %v2098_v18 = vpack.c.bf16 %v443_v26, %v436_v7  ;;  %v2104_v59 = vpack.c.bf16 %v471_v55, %v464_v40  ;;  %v2008_v60 = vpack.c.bf16 %v400_v46, %v393_v58  ;;  %v2185_v7 = vld [vmem:[%s3967_s0 + $0xe0] sm:$0xff]  ;;  %v463_v40 = vld [vmem:[%s3968_s1 + $0xcd8] sm:$0xff]  ;;  %v470_v53 = vld [vmem:[%s3968_s1 + $0xd10] sm:$0xff] }
  0xcb   :  { %2094 = vmatprep.subr.bf16.mxu1 %v2215_v50  ;;  %1086 = vmatmul.mubr.f32.gmra.mrb[26].mxu0 %v2177_v12  ;;  %v435_v12 = vld [vmem:[%s3968_s1 + $0xbf8] sm:$0xff]  ;;  %v2028_v55 = vpack.c.bf16 %v470_v53, %v463_v40  ;;  %v462_v58 = vld [vmem:[%s3968_s1 + $0xcd0] sm:$0xff]  ;;  %v469_v46 = vld [vmem:[%s3968_s1 + $0xd08] sm:$0xff] }
  0xcc   :  { %1600 = vmatprep.mubr.msk.f32.mxu1 %vm472_vm0, %v3032_v43  ;;  %1091 = vmatprep.mubr.f32.mxu0 %v2178_v14  ;;  %v371_v43 = vld [vmem:[%s3968_s1 + $0x9f8] sm:$0xff]  ;;  %v442_v14 = vld [vmem:[%s3968_s1 + $0xc30] sm:$0xff] }
  0xcd   :  { %1995 = vmatpush1.bf16.msra.mxu0 %v1994_v4  ;;  %v2002_v33 = vpack.c.bf16 %v371_v43, %v364_v37  ;;  %v413_v4 = vld [vmem:[%s3968_s1 + $0xb48] sm:$0xff]  ;;  %v2020_v42 = vpack.c.bf16 %v442_v14, %v435_v12  ;;  %v434_v37 = vld [vmem:[%s3968_s1 + $0xbf0] sm:$0xff] }
  0xce   :  { %2096 = vmatpush1.bf16.msra.mxu1 %v2095_v28  ;;  %1997 = vmatprep.subr.bf16.mxu0 %v1996_v30  ;;  %v421_v28 = vld [vmem:[%s3968_s1 + $0xb88] sm:$0xff]  ;;  %v428_v30 = vld [vmem:[%s3968_s1 + $0xbc0] sm:$0xff]  ;;  %v2014_v21 = vpack.c.bf16 %v413_v4, %v406_v3 }
  0xcf   :  { %2097 = vmatprep.subr.bf16.mxu1 %v2215_v50  ;;  %1092 = vmatmul.mubr.f32.gmra.mrb[28].mxu0 %v2179_v29  ;;  %v2016_v26 = vpack.c.bf16 %v428_v30, %v421_v28  ;;  %v441_v43 = vld [vmem:[%s3968_s1 + $0xc28] sm:$0xff]  ;;  %v2190_v29 = vld [vmem:[%s3967_s0 + $0x18] sm:$0xff] }
  0xd0   :  { %1097 = vmatprep.mubr.f32.mxu0 %v2180_v31  ;;  %v2022_v31 = vpack.c.bf16 %v441_v43, %v434_v37 }
  0xd1   :  { %1999 = vmatpush1.bf16.msra.mxu0 %v1998_v17  ;;  %v2187_v17 = vld [vmem:[%s3967_s0 + $0x100] sm:$0xff] }
  0xd2   :  { %2099 = vmatpush1.bf16.msra.mxu1 %v2098_v18  ;;  %2001 = vmatprep.subr.bf16.mxu0 %v2000_v19  ;;  %v2188_v18 = vld [vmem:[%s3967_s0 + $0x128] sm:$0xff]  ;;  %v2018_v19 = vpack.c.bf16 %v427_v10, %v420_v23 }
  0xd3   :  { %2100 = vmatprep.subr.bf16.mxu1 %v2215_v50  ;;  %1098 = vmatmul.mubr.f32.gmra.mrb[30].mxu0 %v2181_v48  ;;  %v2030_v48 = vpack.c.bf16 %v469_v46, %v462_v58 }
  0xd4   :  { %1103 = vmatprep.mubr.f32.mxu0 %v2182_v49 }
  0xd5   :  { %2003 = vmatpush1.bf16.msra.mxu0 %v2002_v33  ;;  %v2024_v33 = vpack.c.bf16 %v456_v39, %v449_v44 }
  0xd6   :  { %2102 = vmatpush1.bf16.msra.mxu1 %v2101_v35  ;;  %2005 = vmatprep.subr.bf16.mxu0 %v2004_v38  ;;  %v448_v35 = vld [vmem:[%s3968_s1 + $0xc60] sm:$0xff]  ;;  %v455_v38 = vld [vmem:[%s3968_s1 + $0xc98] sm:$0xff]  ;;  %s2216_s1 = smov [#allocation2]  }
  0xd7   :  { %2103 = vmatprep.subr.bf16.mxu1 %v2215_v50  ;;  %1104 = vmatmul.mubr.f32.gmra.mrb[32].mxu0 %v2183_v8  ;;  %v2010_v50 = vpack.c.bf16 %v399_v5, %v392_v61  ;;  %v2026_v56 = vpack.c.bf16 %v455_v38, %v448_v35  ;;  %s1559_s18 = sshll.u32 %s2216_s1, 4  ;;  %s1560_s18 = int_to_ptr.vmem [resolvable:$true] %s1559_s18 }
  0xd8   :  { %1109 = vmatprep.mubr.f32.mxu0 %v2184_v62  ;;  %s2191_s19 = scalar_lea.vmem %s1560_s18, 8960  ;;  %p2196_p1 = scmp.lt.s32.totalorder %s1560_s18, %s1560_s18 }
  0xd9   :  { %2007 = vmatpush1.bf16.msra.mxu0 %v2006_v15  ;;  %p2192_p0 = scmp.ne.s32.totalorder %s1560_s18, %s2191_s19  ;;  %p2197_p2 = scmp.lt.s32.totalorder %s2191_s19, %s2191_s19 }
  0xda   :  { %2105 = vmatpush1.bf16.msra.mxu1 %v2104_v59  ;;  %2009 = vmatprep.subr.bf16.mxu0 %v2008_v60 }
  0xdb   :  { %1110 = vmatmul.mubr.f32.gmra.mrb[34].mxu0 %v2185_v7  ;;  %p2198_p3 = por %p2197_p2, %p2196_p1 }
  0xdc   :  { %1115 = vmatprep.mubr.f32.mxu0 %v2186_v24 }
  0xdd   :  { %1433 = vmatmul.mubr.f32.vlgmr.msra.gmra.mrb[40].mxu1 %v3132_v47  ;;  %2011 = vmatpush1.bf16.msra.mxu0 %v2010_v50  ;;  %p2199_p4 = pnand %p2198_p3, %p2192_p0 }
  0xde   :  { %1601 = vmatprep.mubr.msk.f32.mxu1 %vm472_vm0, %v3149_v54  ;;  %2013 = vmatprep.subr.bf16.mxu0 %v2012_v0 }
  0xdf   :  { %1116 = vmatmul.mubr.f32.gmra.mrb[36].mxu0 %v2187_v17 }
  0xe0   :  { %1121 = vmatprep.mubr.f32.mxu0 %v2188_v18 }
  0xe1   :  { %1438 = vmatmul.mubr.f32.gmra.mrb[42].mxu1 %v3168_v1  ;;  %2015 = vmatpush1.bf16.msra.mxu0 %v2014_v21 }
  0xe2   :  { %1602 = vmatprep.mubr.msk.f32.mxu1 %vm472_vm0, %v3189_v11  ;;  %2017 = vmatprep.subr.bf16.mxu0 %v2016_v26 }
  0xe3   :  { %1122 = vmatmul.mubr.f32.gmra.mrb[38].mxu0 %v2189_v25 }
  0xe4   :  { %1590 = vmatprep.mubr.msk.f32.mxu0 %vm472_vm0, %v2190_v29 }
  0xe5   :  { %1443 = vmatmul.mubr.f32.gmra.mrb[44].mxu1 %v3208_v20  ;;  %2019 = vmatpush1.bf16.msra.mxu0 %v2018_v19 }
  0xe6   :  { %1603 = vmatprep.mubr.msk.f32.mxu1 %vm472_vm0, %v3229_v32  ;;  %2021 = vmatprep.subr.bf16.mxu0 %v2020_v42 }
  0xe9   :  { %1448 = vmatmul.mubr.f32.gmra.mrb[46].mxu1 %v3248_v45  ;;  %2023 = vmatpush1.bf16.msra.mxu0 %v2022_v31 }
  0xea   :  { %1604 = vmatprep.mubr.msk.f32.mxu1 %vm472_vm0, %v3269_v52  ;;  %2025 = vmatprep.subr.bf16.mxu0 %v2024_v33 }
  0xed   :  { %1453 = vmatmul.mubr.f32.gmra.mrb[48].mxu1 %v3288_v2  ;;  %2027 = vmatpush1.bf16.msra.mxu0 %v2026_v56 }
  0xee   :  { %1605 = vmatprep.mubr.msk.f32.mxu1 %vm472_vm0, %v3309_v13  ;;  %2029 = vmatprep.subr.bf16.mxu0 %v2028_v55 }
  0xf1   :  { %1458 = vmatmul.mubr.f32.gmra.mrb[50].mxu1 %v3328_v27  ;;  %2031 = vmatpush1.bf16.msra.mxu0 %v2030_v48 }
  0xf2   :  { %1606 = vmatprep.mubr.msk.f32.mxu1 %vm472_vm0, %v3349_v36 }
  0xf4   :  { %1193 = vmatmul.mubr.f32.vlgmr.msra.gmra.mrb[20].mxu0 %v3132_v47 }
  0xf5   :  { %1463 = vmatmul.mubr.f32.gmra.mrb[52].mxu1 %v3368_v51  ;;  %1591 = vmatprep.mubr.msk.f32.mxu0 %vm472_vm0, %v3149_v54 }
  0xf6   :  { %1607 = vmatprep.mubr.msk.f32.mxu1 %vm472_vm0, %v3389_v63 }
  0xf8   :  { %1199 = vmatmul.mubr.f32.gmra.mrb[22].mxu0 %v3168_v1 }
  0xf9   :  { %1468 = vmatmul.mubr.f32.gmra.mrb[54].mxu1 %v3408_v16  ;;  %1592 = vmatprep.mubr.msk.f32.mxu0 %vm472_vm0, %v3189_v11 }
  0xfa   :  { %1608 = vmatprep.mubr.msk.f32.mxu1 %vm472_vm0, %v3423_v22 }
  0xfc   :  { %1205 = vmatmul.mubr.f32.gmra.mrb[24].mxu0 %v3208_v20 }
  0xfd   :  { %1473 = vmatmul.mubr.f32.gmra.mrb[56].mxu1 %v3436_v34  ;;  %1593 = vmatprep.mubr.msk.f32.mxu0 %vm472_vm0, %v3229_v32 }
  0xfe   :  { %1609 = vmatprep.mubr.msk.f32.mxu1 %vm472_vm0, %v3451_v41 }
 0x100   :  { %1211 = vmatmul.mubr.f32.gmra.mrb[26].mxu0 %v3248_v45 }
 0x101   :  { %1478 = vmatmul.mubr.f32.gmra.mrb[58].mxu1 %v3465_v57  ;;  %1594 = vmatprep.mubr.msk.f32.mxu0 %vm472_vm0, %v3269_v52 }
 0x104   :  { %1217 = vmatmul.mubr.f32.gmra.mrb[28].mxu0 %v3288_v2 }
 0x105   :  { %1595 = vmatprep.mubr.msk.f32.mxu0 %vm472_vm0, %v3309_v13 }
 0x108   :  { %1223 = vmatmul.mubr.f32.gmra.mrb[30].mxu0 %v3328_v27 }
 0x109   :  { %1596 = vmatprep.mubr.msk.f32.mxu0 %vm472_vm0, %v3349_v36 }
 0x10c   :  { %1229 = vmatmul.mubr.f32.gmra.mrb[32].mxu0 %v3368_v51 }
 0x10d   :  { %1597 = vmatprep.mubr.msk.f32.mxu0 %vm472_vm0, %v3389_v63 }
 0x110   :  { %1235 = vmatmul.mubr.f32.gmra.mrb[34].mxu0 %v3408_v16 }
 0x111   :  { %1598 = vmatprep.mubr.msk.f32.mxu0 %vm472_vm0, %v3423_v22 }
 0x114   :  { %1241 = vmatmul.mubr.f32.gmra.mrb[36].mxu0 %v3436_v34 }
 0x115   :  { %1599 = vmatprep.mubr.msk.f32.mxu0 %vm472_vm0, %v3451_v41 }
 0x118   :  { %1247 = vmatmul.mubr.f32.gmra.mrb[38].mxu0 %v3465_v57 }
 0x14f   :  { %v694_v47 = vpop.f32.mrb[0].mxu0 }
 0x150   :  { %1483 = vst [vmem:[#allocation2] sm:$0xff] %v694_v47  ;;  %v944_v54 = vpop.f32.mrb[0].mxu1  ;;  %v696_v1 = vpop.f32.mrb[1].mxu0 }
 0x151   :  { %1485 = vst [vmem:[#allocation2 + $0x10] sm:$0xff] %v944_v54  ;;  %1484 = vst [vmem:[#allocation2 + $0x8] sm:$0xff] %v696_v1  ;;  %v946_v11 = vpop.f32.mrb[1].mxu1 }
 0x152   :  { %1486 = vst [vmem:[#allocation2 + $0x18] sm:$0xff] %v946_v11 }
 0x153   :  { %v700_v20 = vpop.f32.mrb[2].mxu0 }
 0x154   :  { %1491 = vst [vmem:[#allocation2 + $0x38] sm:$0xff] %v700_v20  ;;  %v950_v32 = vpop.f32.mrb[2].mxu1  ;;  %v702_v45 = vpop.f32.mrb[3].mxu0 }
 0x155   :  { %1493 = vst [vmem:[#allocation2 + $0x48] sm:$0xff] %v950_v32  ;;  %1492 = vst [vmem:[#allocation2 + $0x40] sm:$0xff] %v702_v45  ;;  %v952_v52 = vpop.f32.mrb[3].mxu1 }
 0x156   :  { %1494 = vst [vmem:[#allocation2 + $0x50] sm:$0xff] %v952_v52 }
 0x157   :  { %v706_v2 = vpop.f32.mrb[4].mxu0 }
 0x158   :  { %1498 = vst [vmem:[#allocation2 + $0x70] sm:$0xff] %v706_v2  ;;  %v956_v13 = vpop.f32.mrb[4].mxu1  ;;  %v708_v27 = vpop.f32.mrb[5].mxu0 }
 0x159   :  { %1500 = vst [vmem:[#allocation2 + $0x80] sm:$0xff] %v956_v13  ;;  %1499 = vst [vmem:[#allocation2 + $0x78] sm:$0xff] %v708_v27  ;;  %v958_v36 = vpop.f32.mrb[5].mxu1 }
 0x15a   :  { %1501 = vst [vmem:[#allocation2 + $0x88] sm:$0xff] %v958_v36 }
 0x15b   :  { %v712_v51 = vpop.f32.mrb[6].mxu0 }
 0x15c   :  { %1505 = vst [vmem:[#allocation2 + $0xa8] sm:$0xff] %v712_v51  ;;  %v962_v63 = vpop.f32.mrb[6].mxu1  ;;  %v714_v16 = vpop.f32.mrb[7].mxu0 }
 0x15d   :  { %1507 = vst [vmem:[#allocation2 + $0xb8] sm:$0xff] %v962_v63  ;;  %1506 = vst [vmem:[#allocation2 + $0xb0] sm:$0xff] %v714_v16  ;;  %v964_v22 = vpop.f32.mrb[7].mxu1 }
 0x15e   :  { %1508 = vst [vmem:[#allocation2 + $0xc0] sm:$0xff] %v964_v22 }
 0x15f   :  { %v718_v34 = vpop.f32.mrb[8].mxu0 }
 0x160   :  { %1512 = vst [vmem:[#allocation2 + $0xe0] sm:$0xff] %v718_v34  ;;  %v968_v41 = vpop.f32.mrb[8].mxu1  ;;  %v720_v57 = vpop.f32.mrb[9].mxu0 }
 0x161   :  { %1514 = vst [vmem:[#allocation2 + $0xf0] sm:$0xff] %v968_v41  ;;  %1513 = vst [vmem:[#allocation2 + $0xe8] sm:$0xff] %v720_v57  ;;  %v970_v49 = vpop.f32.mrb[9].mxu1 }
 0x162   :  { %1515 = vst [vmem:[#allocation2 + $0xf8] sm:$0xff] %v970_v49 }
 0x163   :  { %v724_v15 = vpop.f32.mrb[10].mxu0 }
 0x164   :  { %1519 = vst [vmem:[#allocation2 + $0x118] sm:$0xff] %v724_v15  ;;  %v974_v59 = vpop.f32.mrb[10].mxu1  ;;  %v726_v60 = vpop.f32.mrb[11].mxu0 }
 0x165   :  { %1521 = vst [vmem:[#allocation2 + $0x128] sm:$0xff] %v974_v59  ;;  %1520 = vst [vmem:[#allocation2 + $0x120] sm:$0xff] %v726_v60  ;;  %v976_v61 = vpop.f32.mrb[11].mxu1 }
 0x166   :  { %1522 = vst [vmem:[#allocation2 + $0x130] sm:$0xff] %v976_v61 }
 0x167   :  { %v730_v5 = vpop.f32.mrb[12].mxu0 }
 0x168   :  { %1526 = vst [vmem:[#allocation2 + $0x150] sm:$0xff] %v730_v5  ;;  %v980_v6 = vpop.f32.mrb[12].mxu1  ;;  %v732_v9 = vpop.f32.mrb[13].mxu0 }
 0x169   :  { %1528 = vst [vmem:[#allocation2 + $0x160] sm:$0xff] %v980_v6  ;;  %1527 = vst [vmem:[#allocation2 + $0x158] sm:$0xff] %v732_v9  ;;  %v982_v8 = vpop.f32.mrb[13].mxu1 }
 0x16a   :  { %1529 = vst [vmem:[#allocation2 + $0x168] sm:$0xff] %v982_v8 }
 0x16b   :  { %v736_v62 = vpop.f32.mrb[14].mxu0 }
 0x16c   :  { %1533 = vst [vmem:[#allocation2 + $0x188] sm:$0xff] %v736_v62  ;;  %v986_v50 = vpop.f32.mrb[14].mxu1  ;;  %v738_v0 = vpop.f32.mrb[15].mxu0 }
 0x16d   :  { %1535 = vst [vmem:[#allocation2 + $0x198] sm:$0xff] %v986_v50  ;;  %1534 = vst [vmem:[#allocation2 + $0x190] sm:$0xff] %v738_v0  ;;  %v988_v3 = vpop.f32.mrb[15].mxu1 }
 0x16e   :  { %1536 = vst [vmem:[#allocation2 + $0x1a0] sm:$0xff] %v988_v3 }
 0x16f   :  { %v742_v4 = vpop.f32.mrb[16].mxu0 }
 0x170   :  { %1540 = vst [vmem:[#allocation2 + $0x1c0] sm:$0xff] %v742_v4  ;;  %v992_v28 = vpop.f32.mrb[16].mxu1  ;;  %v744_v30 = vpop.f32.mrb[17].mxu0 }
 0x171   :  { %1542 = vst [vmem:[#allocation2 + $0x1d0] sm:$0xff] %v992_v28  ;;  %1541 = vst [vmem:[#allocation2 + $0x1c8] sm:$0xff] %v744_v30  ;;  %v994_v7 = vpop.f32.mrb[17].mxu1 }
 0x172   :  { %1543 = vst [vmem:[#allocation2 + $0x1d8] sm:$0xff] %v994_v7 }
 0x173   :  { %v748_v24 = vpop.f32.mrb[18].mxu0 }
 0x174   :  { %1547 = vst [vmem:[#allocation2 + $0x1f8] sm:$0xff] %v748_v24  ;;  %v998_v21 = vpop.f32.mrb[18].mxu1  ;;  %v750_v26 = vpop.f32.mrb[19].mxu0 }
 0x175   :  { %1549 = vst [vmem:[#allocation2 + $0x208] sm:$0xff] %v998_v21  ;;  %1548 = vst [vmem:[#allocation2 + $0x200] sm:$0xff] %v750_v26  ;;  %v1000_v23 = vpop.f32.mrb[19].mxu1 }
 0x176   :  { %1550 = vst [vmem:[#allocation2 + $0x210] sm:$0xff] %v1000_v23 }
 0x178   :  { %v1642_v10 = vpop.f32.mrb[20].mxu1 }
 0x179   :  { %v1643_v12 = vpop.f32.mrb[21].mxu1 }
 0x17a   :  { %v1644_v14 = vadd.f32 %v1643_v12, %v1642_v10 }
 0x17c   :  { %v1645_v17 = vpop.f32.mrb[22].mxu1 }
 0x17d   :  { %v1646_v18 = vpop.f32.mrb[23].mxu1 }
 0x17e   :  { %v1647_v19 = vadd.f32 %v1646_v18, %v1645_v17 }
 0x180   :  { %v1648_v42 = vpop.f32.mrb[24].mxu1 }
 0x181   :  { %v1649_v37 = vpop.f32.mrb[25].mxu1 }
 0x182   :  { %v1650_v43 = vadd.f32 %v1649_v37, %v1648_v42 }
 0x184   :  { %v1651_v44 = vpop.f32.mrb[26].mxu1 }
 0x185   :  { %v1652_v39 = vpop.f32.mrb[27].mxu1 }
 0x186   :  { %v1653_v25 = vadd.f32 %v1652_v39, %v1651_v44 }
 0x188   :  { %v1654_v29 = vpop.f32.mrb[28].mxu1 }
 0x189   :  { %v1655_v31 = vpop.f32.mrb[29].mxu1 }
 0x18a   :  { %v1656_v33 = vadd.f32 %v1655_v31, %v1654_v29 }
 0x18c   :  { %v1657_v35 = vpop.f32.mrb[30].mxu1 }
 0x18d   :  { %v1658_v38 = vpop.f32.mrb[31].mxu1 }
 0x18e   :  { %v1659_v40 = vadd.f32 %v1658_v38, %v1657_v35 }
 0x190   :  { %v1660_v53 = vpop.f32.mrb[32].mxu1 }
 0x191   :  { %v1661_v56 = vpop.f32.mrb[33].mxu1 }
 0x192   :  { %v1662_v55 = vadd.f32 %v1661_v56, %v1660_v53 }
 0x194   :  { %v1663_v58 = vpop.f32.mrb[34].mxu1 }
 0x195   :  { %v1664_v46 = vpop.f32.mrb[35].mxu1 }
 0x196   :  { %v1665_v48 = vadd.f32 %v1664_v46, %v1663_v58 }
 0x198   :  { %v1666_v47 = vpop.f32.mrb[36].mxu1 }
 0x199   :  { %v1667_v54 = vpop.f32.mrb[37].mxu1 }
 0x19a   :  { %v1668_v1 = vadd.f32 %v1667_v54, %v1666_v47 }
 0x19c   :  { %v1669_v11 = vpop.f32.mrb[38].mxu1 }
 0x19d   :  { %v1670_v20 = vpop.f32.mrb[39].mxu1 }
 0x19e   :  { %v1671_v32 = vadd.f32 %v1670_v20, %v1669_v11 }
 0x1b0   :  { %v1434_v45 = vpop.f32.mrb[40].mxu1 }
 0x1b1   :  { %v1435_v52 = vadd.f32 %v1644_v14, %v1434_v45  ;;  %v1436_v2 = vpop.f32.mrb[41].mxu1 }
 0x1b3   :  { %1490 = vst.msk [vmem:[#allocation2 + $0x30] sm:$0xff] %vm1489_vm1, %v1435_v52 }
 0x1b4   :  { %v1439_v13 = vpop.f32.mrb[42].mxu1 }
 0x1b5   :  { %v1440_v27 = vadd.f32 %v1647_v19, %v1439_v13  ;;  %v1441_v36 = vpop.f32.mrb[43].mxu1 }
 0x1b7   :  { %1497 = vst.msk [vmem:[#allocation2 + $0x68] sm:$0xff] %vm1489_vm1, %v1440_v27 }
 0x1b8   :  { %v1444_v51 = vpop.f32.mrb[44].mxu1 }
 0x1b9   :  { %v1445_v63 = vadd.f32 %v1650_v43, %v1444_v51  ;;  %v1446_v16 = vpop.f32.mrb[45].mxu1 }
 0x1bb   :  { %1504 = vst.msk [vmem:[#allocation2 + $0xa0] sm:$0xff] %vm1489_vm1, %v1445_v63 }
 0x1bc   :  { %v1449_v22 = vpop.f32.mrb[46].mxu1 }
 0x1bd   :  { %v1450_v34 = vadd.f32 %v1653_v25, %v1449_v22  ;;  %v1451_v41 = vpop.f32.mrb[47].mxu1 }
 0x1bf   :  { %1511 = vst.msk [vmem:[#allocation2 + $0xd8] sm:$0xff] %vm1489_vm1, %v1450_v34 }
 0x1c0   :  { %v1454_v57 = vpop.f32.mrb[48].mxu1 }
 0x1c1   :  { %v1455_v49 = vadd.f32 %v1656_v33, %v1454_v57  ;;  %v1456_v15 = vpop.f32.mrb[49].mxu1 }
 0x1c3   :  { %1518 = vst.msk [vmem:[#allocation2 + $0x110] sm:$0xff] %vm1489_vm1, %v1455_v49 }
 0x1c4   :  { %v1459_v59 = vpop.f32.mrb[50].mxu1 }
 0x1c5   :  { %v1460_v60 = vadd.f32 %v1659_v40, %v1459_v59  ;;  %v1461_v61 = vpop.f32.mrb[51].mxu1 }
 0x1c7   :  { %1525 = vst.msk [vmem:[#allocation2 + $0x148] sm:$0xff] %vm1489_vm1, %v1460_v60  ;;  %v1194_v5 = vpop.f32.mrb[20].mxu0 }
 0x1c8   :  { %v1464_v6 = vpop.f32.mrb[52].mxu1  ;;  %1487 = vst [vmem:[#allocation2 + $0x20] sm:$0xff] %v1194_v5  ;;  %v1196_v9 = vpop.f32.mrb[21].mxu0 }
 0x1c9   :  { %v1465_v8 = vadd.f32 %v1662_v55, %v1464_v6  ;;  %1488 = vst [vmem:[#allocation2 + $0x28] sm:$0xff] %v1196_v9  ;;  %v1466_v62 = vpop.f32.mrb[53].mxu1 }
 0x1cb   :  { %1532 = vst.msk [vmem:[#allocation2 + $0x180] sm:$0xff] %vm1489_vm1, %v1465_v8  ;;  %v1200_v50 = vpop.f32.mrb[22].mxu0 }
 0x1cc   :  { %v1469_v0 = vpop.f32.mrb[54].mxu1  ;;  %1495 = vst [vmem:[#allocation2 + $0x58] sm:$0xff] %v1200_v50  ;;  %v1202_v3 = vpop.f32.mrb[23].mxu0 }
 0x1cd   :  { %v1470_v4 = vadd.f32 %v1665_v48, %v1469_v0  ;;  %1496 = vst [vmem:[#allocation2 + $0x60] sm:$0xff] %v1202_v3  ;;  %v1471_v28 = vpop.f32.mrb[55].mxu1 }
 0x1cf   :  { %1539 = vst.msk [vmem:[#allocation2 + $0x1b8] sm:$0xff] %vm1489_vm1, %v1470_v4  ;;  %v1206_v30 = vpop.f32.mrb[24].mxu0 }
 0x1d0   :  { %v1474_v7 = vpop.f32.mrb[56].mxu1  ;;  %1502 = vst [vmem:[#allocation2 + $0x90] sm:$0xff] %v1206_v30  ;;  %v1208_v24 = vpop.f32.mrb[25].mxu0 }
 0x1d1   :  { %v1475_v21 = vadd.f32 %v1668_v1, %v1474_v7  ;;  %1503 = vst [vmem:[#allocation2 + $0x98] sm:$0xff] %v1208_v24  ;;  %v1476_v26 = vpop.f32.mrb[57].mxu1 }
 0x1d3   :  { %1546 = vst.msk [vmem:[#allocation2 + $0x1f0] sm:$0xff] %vm1489_vm1, %v1475_v21  ;;  %v1212_v23 = vpop.f32.mrb[26].mxu0 }
 0x1d4   :  { %v1479_v10 = vpop.f32.mrb[58].mxu1  ;;  %1509 = vst [vmem:[#allocation2 + $0xc8] sm:$0xff] %v1212_v23  ;;  %v1214_v12 = vpop.f32.mrb[27].mxu0 }
 0x1d5   :  { %v1480_v14 = vadd.f32 %v1671_v32, %v1479_v10  ;;  %1510 = vst [vmem:[#allocation2 + $0xd0] sm:$0xff] %v1214_v12  ;;  %v1481_v17 = vpop.f32.mrb[59].mxu1 }
 0x1d7   :  { %1553 = vst.msk [vmem:[#allocation2 + $0x228] sm:$0xff] %vm1489_vm1, %v1480_v14  ;;  %v1218_v18 = vpop.f32.mrb[28].mxu0 }
 0x1d8   :  { %1516 = vst [vmem:[#allocation2 + $0x100] sm:$0xff] %v1218_v18  ;;  %v1220_v19 = vpop.f32.mrb[29].mxu0 }
 0x1d9   :  { %1517 = vst [vmem:[#allocation2 + $0x108] sm:$0xff] %v1220_v19 }
 0x1db   :  { %v1224_v42 = vpop.f32.mrb[30].mxu0 }
 0x1dc   :  { %1523 = vst [vmem:[#allocation2 + $0x138] sm:$0xff] %v1224_v42  ;;  %v1226_v37 = vpop.f32.mrb[31].mxu0 }
 0x1dd   :  { %1524 = vst [vmem:[#allocation2 + $0x140] sm:$0xff] %v1226_v37 }
 0x1df   :  { %v1230_v43 = vpop.f32.mrb[32].mxu0 }
 0x1e0   :  { %1530 = vst [vmem:[#allocation2 + $0x170] sm:$0xff] %v1230_v43  ;;  %v1232_v44 = vpop.f32.mrb[33].mxu0 }
 0x1e1   :  { %1531 = vst [vmem:[#allocation2 + $0x178] sm:$0xff] %v1232_v44 }
 0x1e3   :  { %v1236_v39 = vpop.f32.mrb[34].mxu0 }
 0x1e4   :  { %1537 = vst [vmem:[#allocation2 + $0x1a8] sm:$0xff] %v1236_v39  ;;  %v1238_v25 = vpop.f32.mrb[35].mxu0 }
 0x1e5   :  { %1538 = vst [vmem:[#allocation2 + $0x1b0] sm:$0xff] %v1238_v25 }
 0x1e7   :  { %v1242_v29 = vpop.f32.mrb[36].mxu0 }
 0x1e8   :  { %1544 = vst [vmem:[#allocation2 + $0x1e0] sm:$0xff] %v1242_v29  ;;  %v1244_v31 = vpop.f32.mrb[37].mxu0 }
 0x1e9   :  { %1545 = vst [vmem:[#allocation2 + $0x1e8] sm:$0xff] %v1244_v31 }
 0x1eb   :  { %v1248_v33 = vpop.f32.mrb[38].mxu0 }
 0x1ec   :  { %1551 = vst [vmem:[#allocation2 + $0x218] sm:$0xff] %v1248_v33  ;;  %v1250_v35 = vpop.f32.mrb[39].mxu0 }
 0x1ed   :  { %1552 = vst [vmem:[#allocation2 + $0x220] sm:$0xff] %v1250_v35 }
 0x1ee   :  { %2202 = shalt.err (!%p2199_p4)
}
 0x1ef   :  { %s2203_s22 = scalar_lea.hbm %s3969_s2, 8960 }
 0x1f0   :  { %p2204_p5 = scmp.ne.s32.totalorder %s3969_s2, %s2203_s22  ;;  %p2207_p6 = scmp.lt.u32.totalorder %s2203_s22, %s3969_s2 }
 0x1f2   :  { %p2209_p7 = pnand %p2207_p6, %p2204_p5 }
 0x1f4   :  { %2212 = shalt.err (!%p2209_p7)
}
 0x1f5   :  { %s2217_s27 = smov 896   ;;  %s2218_s28 = smov 56  }
 0x1f6   :  { %1565 = dma.vmem_to_hbm [thread:$0]  %s1560_s18, 8960, %s3969_s2, [#allocation3], %s2217_s27, %s2217_s27, %s2218_s28  }
 0x1f7   :  { %2213 = dma.done.wait [#allocation3], 8960  }
 0x1f8   :  { %2214 = vsyncadd [#allocation3], 4294958336 }
 0x1f9   :  { %1569 = vsyncpa [#allocation3], 1 }

</bundles_post_ra>
